<compile_context>
chip_gen: v7x
topology: tpu7x:2x2x1
jax: 0.10.0
libtpu: 0.0.40
codegen_flags: <defaults>
</compile_context>

<pallas_src>
import functools
import math

import jax
import jax.numpy as jnp
from jax.experimental import pallas as pl
from jax.experimental.pallas import tpu as pltpu

FC_PAD = 128  # lane-dense output-head width (real output dim is 3, sliced outside)


# ---------------------------------------------------------------- kernel -----

def _kpn2_kernel(
    # resident activations / masks (constant block across layers)
    tgt_ref, src_ref, self_mask_ref, cross_mask_ref, pos_ref,
    emb_w_ref, emb_b_ref,
    # per-layer weight blocks (leading block dim = 1, indexed by grid axis)
    sa_wqkv_ref, sa_bqkv_ref, sa_wo_ref, sa_bo_ref,
    ca_wq_ref, ca_bq_ref, ca_wkv_ref, ca_bkv_ref, ca_wo_ref, ca_bo_ref,
    w1_ref, b1_ref, w2_ref, b2_ref,
    n1g_ref, n1b_ref, n2g_ref, n2b_ref, n3g_ref, n3b_ref,
    # resident final norm + lane-padded output head
    fng_ref, fnb_ref, fcw_ref, fcb_ref,
    # outputs (resident; last_ref doubles as the carried activation buffer)
    knots_ref, last_ref, kv_ref,
    *, B, T, S, E, H, Dh):

    f32 = jnp.float32
    l = pl.program_id(0)

    def ln(x, g, b):
        mu = jnp.mean(x, axis=-1, keepdims=True)
        var = jnp.mean((x - mu) ** 2, axis=-1, keepdims=True)
        return (x - mu) * jax.lax.rsqrt(var + 1e-5) * g + b

    def split_heads(x2d, col0, rows):
        # (B*rows, cols) lane-slice per head -> (B*H, rows, Dh); heads are stacked
        # along a *major* axis (cheap vreg stacking, no 4-D transpose).
        parts = [x2d[:, col0 + h * Dh: col0 + (h + 1) * Dh].reshape(B, 1, rows, Dh)
                 for h in range(H)]
        return jnp.concatenate(parts, axis=1).reshape(B * H, rows, Dh)

    def merge_heads(o_bh, rows):
        # (B*H, rows, Dh) -> (B*rows, E): one lane-axis concat of the H heads.
        o4 = o_bh.reshape(B, H, rows, Dh)
        return jnp.concatenate([o4[:, h] for h in range(H)],
                               axis=-1).reshape(B * rows, E)

    def attn(q_bh, k_bh, v_bh, mask, Skv):
        # 1/sqrt(Dh) already folded into the Q projection weights.
        s = jnp.einsum("btd,bsd->bts", q_bh, k_bh, preferred_element_type=f32)
        s = s.reshape(B, H, T, Skv) + mask            # mask broadcasts over H or T
        s = s - jnp.max(s, axis=-1, keepdims=True)
        p = jnp.exp(s)
        denom = jnp.sum(p, axis=-1, keepdims=True)    # (B, H, T, 1)
        o = jnp.einsum("bts,bsd->btd", p.reshape(B * H, T, Skv), v_bh,
                       preferred_element_type=f32)
        o = o * pl.reciprocal(denom.reshape(B * H, T, 1), approx=True)
        return merge_heads(o, T)

    # ----- layer 0: embedding_tgt into the resident activation buffer -----
    @pl.when(l == 0)
    def _():
        last_ref[...] = (jnp.dot(tgt_ref[...], emb_w_ref[...],
                                 preferred_element_type=f32) + emb_b_ref[...])

    x = last_ref[...]                                  # (B*T, E)
    src2d = src_ref[...]                               # (B*S, E)

    # ---- self attention (packed QKV projection, single W_o GEMM) ----
    qkv = jnp.dot(x, sa_wqkv_ref[0], preferred_element_type=f32) + sa_bqkv_ref[0]
    sa = attn(split_heads(qkv, 0, T), split_heads(qkv, E, T),
              split_heads(qkv, 2 * E, T), self_mask_ref[...], T)
    sa = jnp.dot(sa, sa_wo_ref[0], preferred_element_type=f32) + sa_bo_ref[0]
    x = ln(x + sa, n1g_ref[0], n1b_ref[0])

    # ---- cross attention (packed KV projection of memory) ----
    qc = jnp.dot(x, ca_wq_ref[0], preferred_element_type=f32) + ca_bq_ref[0]
    kvc = jnp.dot(src2d, ca_wkv_ref[0], preferred_element_type=f32) + ca_bkv_ref[0]
    ca = attn(split_heads(qc, 0, T), split_heads(kvc, 0, S),
              split_heads(kvc, E, S), cross_mask_ref[...], S)
    ca = jnp.dot(ca, ca_wo_ref[0], preferred_element_type=f32) + ca_bo_ref[0]
    x = ln(x + ca, n2g_ref[0], n2b_ref[0])

    # ---- feed-forward (ReLU) ----
    hmid = jnp.maximum(
        jnp.dot(x, w1_ref[0], preferred_element_type=f32) + b1_ref[0], 0.0)
    ff = jnp.dot(hmid, w2_ref[0], preferred_element_type=f32) + b2_ref[0]
    x = ln(x + ff, n3g_ref[0], n3b_ref[0])

    # carry to next layer / expose as last_output (pre final norm)
    last_ref[...] = x

    # ----- last layer: export lane-dense packed K|V of memory, final norm + head --
    @pl.when(l == pl.num_programs(0) - 1)
    def _():
        kv_ref[...] = kvc                              # (B*S, 2E), 64-lane stores
        xn = ln(x, fng_ref[...], fnb_ref[...])
        y = jnp.dot(xn, fcw_ref[...], preferred_element_type=f32) + fcb_ref[...]
        # sigmoid(y) * pos already zeroes padded rows (== sigmoid(-inf) * 0).
        knots_ref[...] = (jax.nn.sigmoid(y) * pos_ref[...]).astype(knots_ref.dtype)


# ---------------------------------------------------------------- wrapper ----

def _kpn2_forward_impl(params, src, src_mask_position, tgt, tgt_mask_position, nhead):
    B, S, E = src.shape
    T = tgt.shape[1]
    out_dim = tgt.shape[2]
    H = nhead
    Dh = E // H
    L = params["sa_wqkv"].shape[0]
    F = params["w1"].shape[2]
    NEG = jnp.float32(-1e30)

    tgt2d = tgt.astype(jnp.float32).reshape(B * T, out_dim)
    src2d = src.astype(jnp.float32).reshape(B * S, E)

    # causal + tgt padding mask, shared by all heads: (B, 1, T, T)
    causal = jnp.where(jnp.tril(jnp.ones((T, T), dtype=bool)), 0.0, NEG).astype(jnp.float32)
    tgt_pad_add = jnp.where(tgt_mask_position, 0.0, NEG).astype(jnp.float32)     # (B, T)
    self_mask = (causal[None, :, :] + tgt_pad_add[:, None, :])[:, None, :, :]    # (B,1,T,T)

    # memory mask, preserving torch `.repeat((nhead,1,1))` head-major tiling bug:
    # (batch b, head h) uses the src padding row of batch (b*H + h) % B.
    src_pad_add = jnp.where(src_mask_position, 0.0, NEG).astype(jnp.float32)     # (B, S)
    bh = (jnp.arange(B)[:, None] * H + jnp.arange(H)[None, :]) % B               # (B, H)
    cross_mask = src_pad_add[bh][:, :, None, :]                                  # (B,H,1,S)

    pos2d = tgt_mask_position.astype(jnp.float32).reshape(B * T, 1)

    # lane-dense output head weights (pad 3 -> FC_PAD columns; sliced back outside)
    fc_w_pad = jnp.zeros((E, FC_PAD), jnp.float32).at[:, :out_dim].set(params["fc_w"])
    fc_b_pad = jnp.zeros((1, FC_PAD), jnp.float32).at[0, :out_dim].set(params["fc_b"])

    resident_head = [tgt2d, src2d, self_mask, cross_mask, pos2d,
                     params["emb_w"], params["emb_b"]]
    layer_keys = ("sa_wqkv", "sa_bqkv", "sa_wo", "sa_bo",
                  "ca_wq", "ca_bq", "ca_wkv", "ca_bkv", "ca_wo", "ca_bo",
                  "w1", "b1", "w2", "b2",
                  "n1g", "n1b", "n2g", "n2b", "n3g", "n3b")
    layer_args = [params[k] for k in layer_keys]
    resident_tail = [params["norm_g"], params["norm_b"], fc_w_pad, fc_b_pad]
    args = resident_head + layer_args + resident_tail

    def resident_spec(a):
        n = a.ndim
        return pl.BlockSpec(a.shape, lambda l, n=n: (0,) * n)

    def layer_spec(a):
        n = a.ndim
        return pl.BlockSpec((1,) + a.shape[1:], lambda l, n=n: (l,) + (0,) * (n - 1))

    in_specs = ([resident_spec(a) for a in resident_head]
                + [layer_spec(a) for a in layer_args]
                + [resident_spec(a) for a in resident_tail])

    out_shapes = (jax.ShapeDtypeStruct((B * T, FC_PAD), jnp.float32),
                  jax.ShapeDtypeStruct((B * T, E), jnp.float32),
                  jax.ShapeDtypeStruct((B * S, 2 * E), jnp.float32))
    out_specs = (pl.BlockSpec((B * T, FC_PAD), lambda l: (0, 0)),
                 pl.BlockSpec((B * T, E), lambda l: (0, 0)),
                 pl.BlockSpec((B * S, 2 * E), lambda l: (0, 0)))

    # advisory cost estimate for XLA scheduling around the fused call
    BT, BS = B * T, B * S
    flops_layer = (2 * BT * E * (3 * E) + 4 * B * H * T * T * Dh + 2 * BT * E * E
                   + 2 * BT * E * E + 2 * BS * E * (2 * E) + 4 * B * H * T * S * Dh
                   + 2 * BT * E * E + 4 * BT * E * F)
    total_flops = 2 * BT * out_dim * E + L * flops_layer + 2 * BT * E * FC_PAD
    total_trans = L * B * H * T * (T + S) + BT * FC_PAD
    in_bytes = sum(int(a.size) * 4 for a in args)
    out_bytes = 4 * (BT * FC_PAD + BT * E + BS * 2 * E)

    kernel = functools.partial(_kpn2_kernel, B=B, T=T, S=S, E=E, H=H, Dh=Dh)

    knots_pad, last2d, kv2d = pl.pallas_call(
        kernel,
        out_shape=out_shapes,
        grid_spec=pltpu.PrefetchScalarGridSpec(
            num_scalar_prefetch=0, grid=(L,),
            in_specs=in_specs, out_specs=out_specs),
        compiler_params=pltpu.CompilerParams(
            dimension_semantics=("arbitrary",),
            vmem_limit_bytes=16 * 1024 * 1024),
        cost_estimate=pl.CostEstimate(flops=total_flops,
                                      transcendentals=total_trans,
                                      bytes_accessed=in_bytes + out_bytes),
    )(*args)

    knots = knots_pad[:, :out_dim].reshape(B, T, out_dim)
    last_output = last2d.reshape(B, T, E)
    # per-head K/V of memory in batch-major head order (b*nhead + h)
    k_heads = jnp.swapaxes(kv2d[:, :E].reshape(B, S, H, Dh), 1, 2).reshape(B * H, S, Dh)
    v_heads = jnp.swapaxes(kv2d[:, E:].reshape(B, S, H, Dh), 1, 2).reshape(B * H, S, Dh)
    return knots, last_output, (k_heads, v_heads)


kpn2_forward = jax.jit(_kpn2_forward_impl, static_argnames=("nhead",))


# ---------------------------------------------------------------- params -----

def init_params(key, d_model, nhead, num_layers, dim_ff, output_dim=3):
    E, F, L = d_model, dim_ff, num_layers
    scale = 1.0 / math.sqrt(E // nhead)   # folded into Q projection weights/biases
    keys = jax.random.split(key, 2 + L)

    def dense(k, fan_in, fan_out):
        k1, k2 = jax.random.split(k)
        lim = 1.0 / math.sqrt(fan_in)
        w = jax.random.uniform(k1, (fan_in, fan_out), jnp.float32, -lim, lim)
        b = jax.random.uniform(k2, (fan_out,), jnp.float32, -lim, lim)
        return w, b

    emb_w, emb_b = dense(keys[0], output_dim, E)
    fc_w, fc_b = dense(keys[1], E, output_dim)

    sa_wqkv, sa_bqkv, sa_wo, sa_bo = [], [], [], []
    ca_wq, ca_bq, ca_wkv, ca_bkv, ca_wo, ca_bo = [], [], [], [], [], []
    w1s, b1s, w2s, b2s = [], [], [], []
    for i in range(L):
        ks = jax.random.split(keys[2 + i], 10)
        wq, bq = dense(ks[0], E, E)
        wk, bk = dense(ks[1], E, E)
        wv, bv = dense(ks[2], E, E)
        wo, bo = dense(ks[3], E, E)
        sa_wqkv.append(jnp.concatenate([wq * scale, wk, wv], axis=1))
        sa_bqkv.append(jnp.concatenate([bq * scale, bk, bv])[None, :])
        sa_wo.append(wo)
        sa_bo.append(bo[None, :])
        cwq, cbq = dense(ks[4], E, E)
        cwk, cbk = dense(ks[5], E, E)
        cwv, cbv = dense(ks[6], E, E)
        cwo, cbo = dense(ks[7], E, E)
        ca_wq.append(cwq * scale)
        ca_bq.append((cbq * scale)[None, :])
        ca_wkv.append(jnp.concatenate([cwk, cwv], axis=1))
        ca_bkv.append(jnp.concatenate([cbk, cbv])[None, :])
        ca_wo.append(cwo)
        ca_bo.append(cbo[None, :])
        w1, b1 = dense(ks[8], E, F)
        w2, b2 = dense(ks[9], F, E)
        w1s.append(w1); b1s.append(b1[None, :]); w2s.append(w2); b2s.append(b2[None, :])

    ones = jnp.ones((L, 1, E), jnp.float32)
    zeros = jnp.zeros((L, 1, E), jnp.float32)
    return dict(
        emb_w=emb_w, emb_b=emb_b[None, :],
        sa_wqkv=jnp.stack(sa_wqkv), sa_bqkv=jnp.stack(sa_bqkv),
        sa_wo=jnp.stack(sa_wo), sa_bo=jnp.stack(sa_bo),
        ca_wq=jnp.stack(ca_wq), ca_bq=jnp.stack(ca_bq),
        ca_wkv=jnp.stack(ca_wkv), ca_bkv=jnp.stack(ca_bkv),
        ca_wo=jnp.stack(ca_wo), ca_bo=jnp.stack(ca_bo),
        w1=jnp.stack(w1s), b1=jnp.stack(b1s),
        w2=jnp.stack(w2s), b2=jnp.stack(b2s),
        n1g=ones, n1b=zeros, n2g=ones, n2b=zeros, n3g=ones, n3b=zeros,
        norm_g=jnp.ones((1, E), jnp.float32), norm_b=jnp.zeros((1, E), jnp.float32),
        fc_w=fc_w, fc_b=fc_b,
    )


# ---------------------------------------------------------------- main -------

if __name__ == "__main__":
    d_model, nhead, num_layers, dim_ff, output_dim = 32, 4, 2, 64, 3
    B, S, T = 2, 16, 8

    key = jax.random.PRNGKey(0)
    kp, ks, kt = jax.random.split(key, 3)
    params = init_params(kp, d_model, nhead, num_layers, dim_ff, output_dim)

    src = jax.random.normal(ks, (B, S, d_model), jnp.float32)       # memory in d_model
    tgt = jax.random.normal(kt, (B, T, output_dim), jnp.float32)    # knots / SOS / EOS
    src_mask_position = jnp.arange(S)[None, :] < jnp.array([16, 12])[:, None]
    tgt_mask_position = jnp.arange(T)[None, :] < jnp.array([8, 5])[:, None]

    knots, last_output, kv = kpn2_forward(
        params, src, src_mask_position, tgt, tgt_mask_position, nhead=nhead)

    jax.block_until_ready(knots)
    jax.block_until_ready(last_output)
    jax.block_until_ready(kv[0])
    jax.block_until_ready(kv[1])

    assert knots.shape == (B, T, 3)
    assert last_output.shape == (B, T, d_model)
    assert kv[0].shape == (B * nhead, S, d_model // nhead)
    assert kv[1].shape == (B * nhead, S, d_model // nhead)
    print("KERNEL_OK")
</pallas_src>

<mosaic_0001>
module attributes {stable_mosaic.version = 11 : i64} {
  func.func @_kpn2_kernel(%arg0: i32, %arg1: memref<16x3xf32, #tpu.memory_space<vmem>>, %arg2: memref<32x32xf32, #tpu.memory_space<vmem>>, %arg3: memref<2x1x8x8xf32, #tpu.memory_space<vmem>>, %arg4: memref<2x4x1x16xf32, #tpu.memory_space<vmem>>, %arg5: memref<16x1xf32, #tpu.memory_space<vmem>>, %arg6: memref<3x32xf32, #tpu.memory_space<vmem>>, %arg7: memref<1x32xf32, #tpu.memory_space<vmem>>, %arg8: memref<1x32x96xf32, #tpu.memory_space<vmem>>, %arg9: memref<1x1x96xf32, #tpu.memory_space<vmem>>, %arg10: memref<1x32x32xf32, #tpu.memory_space<vmem>>, %arg11: memref<1x1x32xf32, #tpu.memory_space<vmem>>, %arg12: memref<1x32x32xf32, #tpu.memory_space<vmem>>, %arg13: memref<1x1x32xf32, #tpu.memory_space<vmem>>, %arg14: memref<1x32x64xf32, #tpu.memory_space<vmem>>, %arg15: memref<1x1x64xf32, #tpu.memory_space<vmem>>, %arg16: memref<1x32x32xf32, #tpu.memory_space<vmem>>, %arg17: memref<1x1x32xf32, #tpu.memory_space<vmem>>, %arg18: memref<1x32x64xf32, #tpu.memory_space<vmem>>, %arg19: memref<1x1x64xf32, #tpu.memory_space<vmem>>, %arg20: memref<1x64x32xf32, #tpu.memory_space<vmem>>, %arg21: memref<1x1x32xf32, #tpu.memory_space<vmem>>, %arg22: memref<1x1x32xf32, #tpu.memory_space<vmem>>, %arg23: memref<1x1x32xf32, #tpu.memory_space<vmem>>, %arg24: memref<1x1x32xf32, #tpu.memory_space<vmem>>, %arg25: memref<1x1x32xf32, #tpu.memory_space<vmem>>, %arg26: memref<1x1x32xf32, #tpu.memory_space<vmem>>, %arg27: memref<1x1x32xf32, #tpu.memory_space<vmem>>, %arg28: memref<1x32xf32, #tpu.memory_space<vmem>>, %arg29: memref<1x32xf32, #tpu.memory_space<vmem>>, %arg30: memref<32x128xf32, #tpu.memory_space<vmem>>, %arg31: memref<1x128xf32, #tpu.memory_space<vmem>>, %arg32: memref<16x128xf32, #tpu.memory_space<vmem>>, %arg33: memref<16x32xf32, #tpu.memory_space<vmem>>, %arg34: memref<32x64xf32, #tpu.memory_space<vmem>>) attributes {dimension_semantics = [#tpu.dimension_semantics<arbitrary>], iteration_bounds = array<i64: 2>, scalar_prefetch = 0 : i64, scratch_operands = 0 : i64, tpu.core_type = #tpu.core_type<tc>, window_params = [{pipeline_mode = #tpu.pipeline_mode<synchronous>, transform_indices = @transform_0, window_bounds = array<i64: 16, 3>}, {pipeline_mode = #tpu.pipeline_mode<synchronous>, transform_indices = @transform_1, window_bounds = array<i64: 32, 32>}, {pipeline_mode = #tpu.pipeline_mode<synchronous>, transform_indices = @transform_2, window_bounds = array<i64: 2, 1, 8, 8>}, {pipeline_mode = #tpu.pipeline_mode<synchronous>, transform_indices = @transform_3, window_bounds = array<i64: 2, 4, 1, 16>}, {pipeline_mode = #tpu.pipeline_mode<synchronous>, transform_indices = @transform_4, window_bounds = array<i64: 16, 1>}, {pipeline_mode = #tpu.pipeline_mode<synchronous>, transform_indices = @transform_5, window_bounds = array<i64: 3, 32>}, {pipeline_mode = #tpu.pipeline_mode<synchronous>, transform_indices = @transform_6, window_bounds = array<i64: 1, 32>}, {transform_indices = @transform_7, window_bounds = array<i64: 1, 32, 96>}, {transform_indices = @transform_8, window_bounds = array<i64: 1, 1, 96>}, {transform_indices = @transform_9, window_bounds = array<i64: 1, 32, 32>}, {transform_indices = @transform_10, window_bounds = array<i64: 1, 1, 32>}, {transform_indices = @transform_11, window_bounds = array<i64: 1, 32, 32>}, {transform_indices = @transform_12, window_bounds = array<i64: 1, 1, 32>}, {transform_indices = @transform_13, window_bounds = array<i64: 1, 32, 64>}, {transform_indices = @transform_14, window_bounds = array<i64: 1, 1, 64>}, {transform_indices = @transform_15, window_bounds = array<i64: 1, 32, 32>}, {transform_indices = @transform_16, window_bounds = array<i64: 1, 1, 32>}, {transform_indices = @transform_17, window_bounds = array<i64: 1, 32, 64>}, {transform_indices = @transform_18, window_bounds = array<i64: 1, 1, 64>}, {transform_indices = @transform_19, window_bounds = array<i64: 1, 64, 32>}, {transform_indices = @transform_20, window_bounds = array<i64: 1, 1, 32>}, {transform_indices = @transform_21, window_bounds = array<i64: 1, 1, 32>}, {transform_indices = @transform_22, window_bounds = array<i64: 1, 1, 32>}, {transform_indices = @transform_23, window_bounds = array<i64: 1, 1, 32>}, {transform_indices = @transform_24, window_bounds = array<i64: 1, 1, 32>}, {transform_indices = @transform_25, window_bounds = array<i64: 1, 1, 32>}, {transform_indices = @transform_26, window_bounds = array<i64: 1, 1, 32>}, {pipeline_mode = #tpu.pipeline_mode<synchronous>, transform_indices = @transform_27, window_bounds = array<i64: 1, 32>}, {pipeline_mode = #tpu.pipeline_mode<synchronous>, transform_indices = @transform_28, window_bounds = array<i64: 1, 32>}, {pipeline_mode = #tpu.pipeline_mode<synchronous>, transform_indices = @transform_29, window_bounds = array<i64: 32, 128>}, {pipeline_mode = #tpu.pipeline_mode<synchronous>, transform_indices = @transform_30, window_bounds = array<i64: 1, 128>}, {pipeline_mode = #tpu.pipeline_mode<synchronous>, transform_indices = @transform_31, window_bounds = array<i64: 16, 128>}, {pipeline_mode = #tpu.pipeline_mode<synchronous>, transform_indices = @transform_32, window_bounds = array<i64: 16, 32>}, {pipeline_mode = #tpu.pipeline_mode<synchronous>, transform_indices = @transform_33, window_bounds = array<i64: 32, 64>}]} {
    %c0_i32 = arith.constant 0 : i32
    %0 = arith.cmpi eq, %arg0, %c0_i32 : i32
    %1 = arith.extui %0 : i1 to i32
    %c0_i32_0 = arith.constant 0 : i32
    %2 = arith.cmpi ne, %1, %c0_i32_0 : i32
    scf.if %2 {
      %c0_105 = arith.constant 0 : index
      %c0_106 = arith.constant 0 : index
      %259 = vector.load %arg1[%c0_105, %c0_106] : memref<16x3xf32, #tpu.memory_space<vmem>>, vector<16x3xf32>
      %c0_107 = arith.constant 0 : index
      %c0_108 = arith.constant 0 : index
      %260 = vector.load %arg6[%c0_107, %c0_108] : memref<3x32xf32, #tpu.memory_space<vmem>>, vector<3x32xf32>
      %cst_109 = arith.constant dense<0.000000e+00> : vector<16x32xf32>
      %261 = tpu.matmul %259, %260, %cst_109 {dimension_numbers = #tpu.dot_dimension_numbers<[1], [0], [0], [1], [0, 0, 1, 1], [], []>} : vector<16x3xf32>, vector<3x32xf32>, vector<16x32xf32> -> vector<16x32xf32>
      %c0_110 = arith.constant 0 : index
      %c0_111 = arith.constant 0 : index
      %262 = vector.load %arg7[%c0_110, %c0_111] : memref<1x32xf32, #tpu.memory_space<vmem>>, vector<1x32xf32>
      %263 = vector.broadcast %262 : vector<1x32xf32> to vector<16x32xf32>
      %264 = arith.addf %261, %263 : vector<16x32xf32>
      %c0_112 = arith.constant 0 : index
      %c0_113 = arith.constant 0 : index
      %265 = vector.load %arg33[%c0_112, %c0_113] : memref<16x32xf32, #tpu.memory_space<vmem>>, vector<16x32xf32>
      tpu.vector_store %arg33[%c0_112, %c0_113], %264 {strides = array<i32>} : memref<16x32xf32, #tpu.memory_space<vmem>>, vector<16x32xf32>,
    } else {
    }
    %c0 = arith.constant 0 : index
    %c0_1 = arith.constant 0 : index
    %3 = vector.load %arg33[%c0, %c0_1] : memref<16x32xf32, #tpu.memory_space<vmem>>, vector<16x32xf32>
    %c0_2 = arith.constant 0 : index
    %c0_3 = arith.constant 0 : index
    %4 = vector.load %arg2[%c0_2, %c0_3] : memref<32x32xf32, #tpu.memory_space<vmem>>, vector<32x32xf32>
    %c0_4 = arith.constant 0 : index
    %c0_5 = arith.constant 0 : index
    %c0_6 = arith.constant 0 : index
    %5 = vector.load %arg8[%c0_4, %c0_5, %c0_6] : memref<1x32x96xf32, #tpu.memory_space<vmem>>, vector<1x32x96xf32>
    %6 = vector.shape_cast %5 : vector<1x32x96xf32> to vector<32x96xf32>
    %cst = arith.constant dense<0.000000e+00> : vector<16x96xf32>
    %7 = tpu.matmul %3, %6, %cst {dimension_numbers = #tpu.dot_dimension_numbers<[1], [0], [0], [1], [0, 0, 1, 1], [], []>} : vector<16x32xf32>, vector<32x96xf32>, vector<16x96xf32> -> vector<16x96xf32>
    %c0_7 = arith.constant 0 : index
    %c0_8 = arith.constant 0 : index
    %c0_9 = arith.constant 0 : index
    %8 = vector.load %arg9[%c0_7, %c0_8, %c0_9] : memref<1x1x96xf32, #tpu.memory_space<vmem>>, vector<1x1x96xf32>
    %9 = vector.shape_cast %8 : vector<1x1x96xf32> to vector<1x96xf32>
    %10 = vector.broadcast %9 : vector<1x96xf32> to vector<16x96xf32>
    %11 = arith.addf %7, %10 : vector<16x96xf32>
    %12 = vector.extract_strided_slice %11 {offsets = [0, 0], sizes = [16, 8], strides = [1, 1]} : vector<16x96xf32> to vector<16x8xf32>
    %13 = vector.shape_cast %12 : vector<16x8xf32> to vector<2x1x8x8xf32>
    %14 = vector.extract_strided_slice %11 {offsets = [0, 8], sizes = [16, 8], strides = [1, 1]} : vector<16x96xf32> to vector<16x8xf32>
    %15 = vector.shape_cast %14 : vector<16x8xf32> to vector<2x1x8x8xf32>
    %16 = vector.extract_strided_slice %11 {offsets = [0, 16], sizes = [16, 8], strides = [1, 1]} : vector<16x96xf32> to vector<16x8xf32>
    %17 = vector.shape_cast %16 : vector<16x8xf32> to vector<2x1x8x8xf32>
    %18 = vector.extract_strided_slice %11 {offsets = [0, 24], sizes = [16, 8], strides = [1, 1]} : vector<16x96xf32> to vector<16x8xf32>
    %19 = vector.shape_cast %18 : vector<16x8xf32> to vector<2x1x8x8xf32>
    %20 = tpu.concatenate %13, %15, %17, %19 in 1 : vector<2x1x8x8xf32>, vector<2x1x8x8xf32>, vector<2x1x8x8xf32>, vector<2x1x8x8xf32> -> vector<2x4x8x8xf32>
    %21 = vector.shape_cast %20 : vector<2x4x8x8xf32> to vector<8x8x8xf32>
    %22 = vector.extract_strided_slice %11 {offsets = [0, 32], sizes = [16, 8], strides = [1, 1]} : vector<16x96xf32> to vector<16x8xf32>
    %23 = vector.shape_cast %22 : vector<16x8xf32> to vector<2x1x8x8xf32>
    %24 = vector.extract_strided_slice %11 {offsets = [0, 40], sizes = [16, 8], strides = [1, 1]} : vector<16x96xf32> to vector<16x8xf32>
    %25 = vector.shape_cast %24 : vector<16x8xf32> to vector<2x1x8x8xf32>
    %26 = vector.extract_strided_slice %11 {offsets = [0, 48], sizes = [16, 8], strides = [1, 1]} : vector<16x96xf32> to vector<16x8xf32>
    %27 = vector.shape_cast %26 : vector<16x8xf32> to vector<2x1x8x8xf32>
    %28 = vector.extract_strided_slice %11 {offsets = [0, 56], sizes = [16, 8], strides = [1, 1]} : vector<16x96xf32> to vector<16x8xf32>
    %29 = vector.shape_cast %28 : vector<16x8xf32> to vector<2x1x8x8xf32>
    %30 = tpu.concatenate %23, %25, %27, %29 in 1 : vector<2x1x8x8xf32>, vector<2x1x8x8xf32>, vector<2x1x8x8xf32>, vector<2x1x8x8xf32> -> vector<2x4x8x8xf32>
    %31 = vector.shape_cast %30 : vector<2x4x8x8xf32> to vector<8x8x8xf32>
    %32 = vector.extract_strided_slice %11 {offsets = [0, 64], sizes = [16, 8], strides = [1, 1]} : vector<16x96xf32> to vector<16x8xf32>
    %33 = vector.shape_cast %32 : vector<16x8xf32> to vector<2x1x8x8xf32>
    %34 = vector.extract_strided_slice %11 {offsets = [0, 72], sizes = [16, 8], strides = [1, 1]} : vector<16x96xf32> to vector<16x8xf32>
    %35 = vector.shape_cast %34 : vector<16x8xf32> to vector<2x1x8x8xf32>
    %36 = vector.extract_strided_slice %11 {offsets = [0, 80], sizes = [16, 8], strides = [1, 1]} : vector<16x96xf32> to vector<16x8xf32>
    %37 = vector.shape_cast %36 : vector<16x8xf32> to vector<2x1x8x8xf32>
    %38 = vector.extract_strided_slice %11 {offsets = [0, 88], sizes = [16, 8], strides = [1, 1]} : vector<16x96xf32> to vector<16x8xf32>
    %39 = vector.shape_cast %38 : vector<16x8xf32> to vector<2x1x8x8xf32>
    %40 = tpu.concatenate %33, %35, %37, %39 in 1 : vector<2x1x8x8xf32>, vector<2x1x8x8xf32>, vector<2x1x8x8xf32>, vector<2x1x8x8xf32> -> vector<2x4x8x8xf32>
    %41 = vector.shape_cast %40 : vector<2x4x8x8xf32> to vector<8x8x8xf32>
    %c0_10 = arith.constant 0 : index
    %c0_11 = arith.constant 0 : index
    %c0_12 = arith.constant 0 : index
    %c0_13 = arith.constant 0 : index
    %42 = vector.load %arg3[%c0_10, %c0_11, %c0_12, %c0_13] : memref<2x1x8x8xf32, #tpu.memory_space<vmem>>, vector<2x1x8x8xf32>
    "tpu.trace_start"() <{level = 10 : i32, message = "btd,bsd->bts"}> : () -> ()
    %cst_14 = arith.constant dense<0.000000e+00> : vector<8x8x8xf32>
    %43 = tpu.matmul %21, %31, %cst_14 {dimension_numbers = #tpu.dot_dimension_numbers<[2], [2], [1], [1], [0, 0, 0, 1, 1, 1], [0], [0]>} : vector<8x8x8xf32>, vector<8x8x8xf32>, vector<8x8x8xf32> -> vector<8x8x8xf32>
    "tpu.trace_stop"() : () -> ()
    %44 = vector.shape_cast %43 : vector<8x8x8xf32> to vector<2x4x8x8xf32>
    %45 = vector.broadcast %42 : vector<2x1x8x8xf32> to vector<2x4x8x8xf32>
    %46 = arith.addf %44, %45 : vector<2x4x8x8xf32>
    %cst_15 = arith.constant dense<0xFF800000> : vector<2x4x8xf32>
    %47 = vector.multi_reduction <maximumf>, %46, %cst_15 [3] : vector<2x4x8x8xf32> to vector<2x4x8xf32>
    %48 = vector.shape_cast %47 : vector<2x4x8xf32> to vector<2x4x8x1xf32>
    %49 = vector.broadcast %48 : vector<2x4x8x1xf32> to vector<2x4x8x8xf32>
    %50 = arith.subf %46, %49 : vector<2x4x8x8xf32>
    %51 = math.exp %50 : vector<2x4x8x8xf32>
    %cst_16 = arith.constant dense<0.000000e+00> : vector<2x4x8xf32>
    %52 = vector.multi_reduction <add>, %51, %cst_16 [3] : vector<2x4x8x8xf32> to vector<2x4x8xf32>
    %53 = vector.shape_cast %52 : vector<2x4x8xf32> to vector<2x4x8x1xf32>
    %54 = vector.shape_cast %51 : vector<2x4x8x8xf32> to vector<8x8x8xf32>
    "tpu.trace_start"() <{level = 10 : i32, message = "bts,bsd->btd"}> : () -> ()
    %cst_17 = arith.constant dense<0.000000e+00> : vector<8x8x8xf32>
    %55 = tpu.matmul %54, %41, %cst_17 {dimension_numbers = #tpu.dot_dimension_numbers<[2], [1], [1], [2], [0, 0, 0, 1, 1, 2], [0], [0]>} : vector<8x8x8xf32>, vector<8x8x8xf32>, vector<8x8x8xf32> -> vector<8x8x8xf32>
    "tpu.trace_stop"() : () -> ()
    %56 = vector.shape_cast %53 : vector<2x4x8x1xf32> to vector<8x8x1xf32>
    %57 = tpu.reciprocal %56 {approx = true} : vector<8x8x1xf32> -> vector<8x8x1xf32>
    %58 = vector.broadcast %57 : vector<8x8x1xf32> to vector<8x8x8xf32>
    %59 = arith.mulf %55, %58 : vector<8x8x8xf32>
    %60 = vector.shape_cast %59 : vector<8x8x8xf32> to vector<2x4x8x8xf32>
    %61 = vector.extract_strided_slice %60 {offsets = [0, 0, 0, 0], sizes = [2, 1, 8, 8], strides = [1, 1, 1, 1]} : vector<2x4x8x8xf32> to vector<2x1x8x8xf32>
    %62 = vector.shape_cast %61 : vector<2x1x8x8xf32> to vector<2x8x8xf32>
    %63 = vector.extract_strided_slice %60 {offsets = [0, 1, 0, 0], sizes = [2, 1, 8, 8], strides = [1, 1, 1, 1]} : vector<2x4x8x8xf32> to vector<2x1x8x8xf32>
    %64 = vector.shape_cast %63 : vector<2x1x8x8xf32> to vector<2x8x8xf32>
    %65 = vector.extract_strided_slice %60 {offsets = [0, 2, 0, 0], sizes = [2, 1, 8, 8], strides = [1, 1, 1, 1]} : vector<2x4x8x8xf32> to vector<2x1x8x8xf32>
    %66 = vector.shape_cast %65 : vector<2x1x8x8xf32> to vector<2x8x8xf32>
    %67 = vector.extract_strided_slice %60 {offsets = [0, 3, 0, 0], sizes = [2, 1, 8, 8], strides = [1, 1, 1, 1]} : vector<2x4x8x8xf32> to vector<2x1x8x8xf32>
    %68 = vector.shape_cast %67 : vector<2x1x8x8xf32> to vector<2x8x8xf32>
    %69 = tpu.concatenate %62, %64, %66, %68 in 2 : vector<2x8x8xf32>, vector<2x8x8xf32>, vector<2x8x8xf32>, vector<2x8x8xf32> -> vector<2x8x32xf32>
    %70 = vector.shape_cast %69 : vector<2x8x32xf32> to vector<16x32xf32>
    %c0_18 = arith.constant 0 : index
    %c0_19 = arith.constant 0 : index
    %c0_20 = arith.constant 0 : index
    %71 = vector.load %arg10[%c0_18, %c0_19, %c0_20] : memref<1x32x32xf32, #tpu.memory_space<vmem>>, vector<1x32x32xf32>
    %72 = vector.shape_cast %71 : vector<1x32x32xf32> to vector<32x32xf32>
    %cst_21 = arith.constant dense<0.000000e+00> : vector<16x32xf32>
    %73 = tpu.matmul %70, %72, %cst_21 {dimension_numbers = #tpu.dot_dimension_numbers<[1], [0], [0], [1], [0, 0, 1, 1], [], []>} : vector<16x32xf32>, vector<32x32xf32>, vector<16x32xf32> -> vector<16x32xf32>
    %c0_22 = arith.constant 0 : index
    %c0_23 = arith.constant 0 : index
    %c0_24 = arith.constant 0 : index
    %74 = vector.load %arg11[%c0_22, %c0_23, %c0_24] : memref<1x1x32xf32, #tpu.memory_space<vmem>>, vector<1x1x32xf32>
    %75 = vector.shape_cast %74 : vector<1x1x32xf32> to vector<1x32xf32>
    %76 = vector.broadcast %75 : vector<1x32xf32> to vector<16x32xf32>
    %77 = arith.addf %73, %76 : vector<16x32xf32>
    %78 = arith.addf %3, %77 : vector<16x32xf32>
    %c0_25 = arith.constant 0 : index
    %c0_26 = arith.constant 0 : index
    %c0_27 = arith.constant 0 : index
    %79 = vector.load %arg22[%c0_25, %c0_26, %c0_27] : memref<1x1x32xf32, #tpu.memory_space<vmem>>, vector<1x1x32xf32>
    %80 = vector.shape_cast %79 : vector<1x1x32xf32> to vector<1x32xf32>
    %c0_28 = arith.constant 0 : index
    %c0_29 = arith.constant 0 : index
    %c0_30 = arith.constant 0 : index
    %81 = vector.load %arg23[%c0_28, %c0_29, %c0_30] : memref<1x1x32xf32, #tpu.memory_space<vmem>>, vector<1x1x32xf32>
    %82 = vector.shape_cast %81 : vector<1x1x32xf32> to vector<1x32xf32>
    %cst_31 = arith.constant dense<0.000000e+00> : vector<16xf32>
    %83 = vector.multi_reduction <add>, %78, %cst_31 [1] : vector<16x32xf32> to vector<16xf32>
    %84 = vector.shape_cast %83 : vector<16xf32> to vector<16x1xf32>
    %cst_32 = arith.constant 3.200000e+01 : f32
    %85 = vector.broadcast %cst_32 : f32 to vector<16x1xf32>
    %86 = arith.divf %84, %85 : vector<16x1xf32>
    %87 = vector.broadcast %86 : vector<16x1xf32> to vector<16x32xf32>
    %88 = arith.subf %78, %87 : vector<16x32xf32>
    %89 = arith.mulf %88, %88 : vector<16x32xf32>
    %cst_33 = arith.constant dense<0.000000e+00> : vector<16xf32>
    %90 = vector.multi_reduction <add>, %89, %cst_33 [1] : vector<16x32xf32> to vector<16xf32>
    %91 = vector.shape_cast %90 : vector<16xf32> to vector<16x1xf32>
    %cst_34 = arith.constant 3.200000e+01 : f32
    %92 = vector.broadcast %cst_34 : f32 to vector<16x1xf32>
    %93 = arith.divf %91, %92 : vector<16x1xf32>
    %94 = vector.broadcast %86 : vector<16x1xf32> to vector<16x32xf32>
    %95 = arith.subf %78, %94 : vector<16x32xf32>
    %cst_35 = arith.constant 9.99999974E-6 : f32
    %96 = vector.broadcast %cst_35 : f32 to vector<16x1xf32>
    %97 = arith.addf %93, %96 : vector<16x1xf32>
    %98 = math.rsqrt %97 : vector<16x1xf32>
    %99 = vector.broadcast %98 : vector<16x1xf32> to vector<16x32xf32>
    %100 = arith.mulf %95, %99 : vector<16x32xf32>
    %101 = vector.broadcast %80 : vector<1x32xf32> to vector<16x32xf32>
    %102 = arith.mulf %100, %101 : vector<16x32xf32>
    %103 = vector.broadcast %82 : vector<1x32xf32> to vector<16x32xf32>
    %104 = arith.addf %102, %103 : vector<16x32xf32>
    %c0_36 = arith.constant 0 : index
    %c0_37 = arith.constant 0 : index
    %c0_38 = arith.constant 0 : index
    %105 = vector.load %arg12[%c0_36, %c0_37, %c0_38] : memref<1x32x32xf32, #tpu.memory_space<vmem>>, vector<1x32x32xf32>
    %106 = vector.shape_cast %105 : vector<1x32x32xf32> to vector<32x32xf32>
    %cst_39 = arith.constant dense<0.000000e+00> : vector<16x32xf32>
    %107 = tpu.matmul %104, %106, %cst_39 {dimension_numbers = #tpu.dot_dimension_numbers<[1], [0], [0], [1], [0, 0, 1, 1], [], []>} : vector<16x32xf32>, vector<32x32xf32>, vector<16x32xf32> -> vector<16x32xf32>
    %c0_40 = arith.constant 0 : index
    %c0_41 = arith.constant 0 : index
    %c0_42 = arith.constant 0 : index
    %108 = vector.load %arg13[%c0_40, %c0_41, %c0_42] : memref<1x1x32xf32, #tpu.memory_space<vmem>>, vector<1x1x32xf32>
    %109 = vector.shape_cast %108 : vector<1x1x32xf32> to vector<1x32xf32>
    %110 = vector.broadcast %109 : vector<1x32xf32> to vector<16x32xf32>
    %111 = arith.addf %107, %110 : vector<16x32xf32>
    %c0_43 = arith.constant 0 : index
    %c0_44 = arith.constant 0 : index
    %c0_45 = arith.constant 0 : index
    %112 = vector.load %arg14[%c0_43, %c0_44, %c0_45] : memref<1x32x64xf32, #tpu.memory_space<vmem>>, vector<1x32x64xf32>
    %113 = vector.shape_cast %112 : vector<1x32x64xf32> to vector<32x64xf32>
    %cst_46 = arith.constant dense<0.000000e+00> : vector<32x64xf32>
    %114 = tpu.matmul %4, %113, %cst_46 {dimension_numbers = #tpu.dot_dimension_numbers<[1], [0], [0], [1], [0, 0, 1, 1], [], []>} : vector<32x32xf32>, vector<32x64xf32>, vector<32x64xf32> -> vector<32x64xf32>
    %c0_47 = arith.constant 0 : index
    %c0_48 = arith.constant 0 : index
    %c0_49 = arith.constant 0 : index
    %115 = vector.load %arg15[%c0_47, %c0_48, %c0_49] : memref<1x1x64xf32, #tpu.memory_space<vmem>>, vector<1x1x64xf32>
    %116 = vector.shape_cast %115 : vector<1x1x64xf32> to vector<1x64xf32>
    %117 = vector.broadcast %116 : vector<1x64xf32> to vector<32x64xf32>
    %118 = arith.addf %114, %117 : vector<32x64xf32>
    %119 = vector.extract_strided_slice %111 {offsets = [0, 0], sizes = [16, 8], strides = [1, 1]} : vector<16x32xf32> to vector<16x8xf32>
    %120 = vector.shape_cast %119 : vector<16x8xf32> to vector<2x1x8x8xf32>
    %121 = vector.extract_strided_slice %111 {offsets = [0, 8], sizes = [16, 8], strides = [1, 1]} : vector<16x32xf32> to vector<16x8xf32>
    %122 = vector.shape_cast %121 : vector<16x8xf32> to vector<2x1x8x8xf32>
    %123 = vector.extract_strided_slice %111 {offsets = [0, 16], sizes = [16, 8], strides = [1, 1]} : vector<16x32xf32> to vector<16x8xf32>
    %124 = vector.shape_cast %123 : vector<16x8xf32> to vector<2x1x8x8xf32>
    %125 = vector.extract_strided_slice %111 {offsets = [0, 24], sizes = [16, 8], strides = [1, 1]} : vector<16x32xf32> to vector<16x8xf32>
    %126 = vector.shape_cast %125 : vector<16x8xf32> to vector<2x1x8x8xf32>
    %127 = tpu.concatenate %120, %122, %124, %126 in 1 : vector<2x1x8x8xf32>, vector<2x1x8x8xf32>, vector<2x1x8x8xf32>, vector<2x1x8x8xf32> -> vector<2x4x8x8xf32>
    %128 = vector.shape_cast %127 : vector<2x4x8x8xf32> to vector<8x8x8xf32>
    %129 = vector.extract_strided_slice %118 {offsets = [0, 0], sizes = [32, 8], strides = [1, 1]} : vector<32x64xf32> to vector<32x8xf32>
    %130 = vector.shape_cast %129 : vector<32x8xf32> to vector<2x1x16x8xf32>
    %131 = vector.extract_strided_slice %118 {offsets = [0, 8], sizes = [32, 8], strides = [1, 1]} : vector<32x64xf32> to vector<32x8xf32>
    %132 = vector.shape_cast %131 : vector<32x8xf32> to vector<2x1x16x8xf32>
    %133 = vector.extract_strided_slice %118 {offsets = [0, 16], sizes = [32, 8], strides = [1, 1]} : vector<32x64xf32> to vector<32x8xf32>
    %134 = vector.shape_cast %133 : vector<32x8xf32> to vector<2x1x16x8xf32>
    %135 = vector.extract_strided_slice %118 {offsets = [0, 24], sizes = [32, 8], strides = [1, 1]} : vector<32x64xf32> to vector<32x8xf32>
    %136 = vector.shape_cast %135 : vector<32x8xf32> to vector<2x1x16x8xf32>
    %137 = tpu.concatenate %130, %132, %134, %136 in 1 : vector<2x1x16x8xf32>, vector<2x1x16x8xf32>, vector<2x1x16x8xf32>, vector<2x1x16x8xf32> -> vector<2x4x16x8xf32>
    %138 = vector.shape_cast %137 : vector<2x4x16x8xf32> to vector<8x16x8xf32>
    %139 = vector.extract_strided_slice %118 {offsets = [0, 32], sizes = [32, 8], strides = [1, 1]} : vector<32x64xf32> to vector<32x8xf32>
    %140 = vector.shape_cast %139 : vector<32x8xf32> to vector<2x1x16x8xf32>
    %141 = vector.extract_strided_slice %118 {offsets = [0, 40], sizes = [32, 8], strides = [1, 1]} : vector<32x64xf32> to vector<32x8xf32>
    %142 = vector.shape_cast %141 : vector<32x8xf32> to vector<2x1x16x8xf32>
    %143 = vector.extract_strided_slice %118 {offsets = [0, 48], sizes = [32, 8], strides = [1, 1]} : vector<32x64xf32> to vector<32x8xf32>
    %144 = vector.shape_cast %143 : vector<32x8xf32> to vector<2x1x16x8xf32>
    %145 = vector.extract_strided_slice %118 {offsets = [0, 56], sizes = [32, 8], strides = [1, 1]} : vector<32x64xf32> to vector<32x8xf32>
    %146 = vector.shape_cast %145 : vector<32x8xf32> to vector<2x1x16x8xf32>
    %147 = tpu.concatenate %140, %142, %144, %146 in 1 : vector<2x1x16x8xf32>, vector<2x1x16x8xf32>, vector<2x1x16x8xf32>, vector<2x1x16x8xf32> -> vector<2x4x16x8xf32>
    %148 = vector.shape_cast %147 : vector<2x4x16x8xf32> to vector<8x16x8xf32>
    %c0_50 = arith.constant 0 : index
    %c0_51 = arith.constant 0 : index
    %c0_52 = arith.constant 0 : index
    %c0_53 = arith.constant 0 : index
    %149 = vector.load %arg4[%c0_50, %c0_51, %c0_52, %c0_53] : memref<2x4x1x16xf32, #tpu.memory_space<vmem>>, vector<2x4x1x16xf32>
    "tpu.trace_start"() <{level = 10 : i32, message = "btd,bsd->bts"}> : () -> ()
    %cst_54 = arith.constant dense<0.000000e+00> : vector<8x8x16xf32>
    %150 = tpu.matmul %128, %138, %cst_54 {dimension_numbers = #tpu.dot_dimension_numbers<[2], [2], [1], [1], [0, 0, 0, 1, 1, 1], [0], [0]>} : vector<8x8x8xf32>, vector<8x16x8xf32>, vector<8x8x16xf32> -> vector<8x8x16xf32>
    "tpu.trace_stop"() : () -> ()
    %151 = vector.shape_cast %150 : vector<8x8x16xf32> to vector<2x4x8x16xf32>
    %152 = vector.broadcast %149 : vector<2x4x1x16xf32> to vector<2x4x8x16xf32>
    %153 = arith.addf %151, %152 : vector<2x4x8x16xf32>
    %cst_55 = arith.constant dense<0xFF800000> : vector<2x4x8xf32>
    %154 = vector.multi_reduction <maximumf>, %153, %cst_55 [3] : vector<2x4x8x16xf32> to vector<2x4x8xf32>
    %155 = vector.shape_cast %154 : vector<2x4x8xf32> to vector<2x4x8x1xf32>
    %156 = vector.broadcast %155 : vector<2x4x8x1xf32> to vector<2x4x8x16xf32>
    %157 = arith.subf %153, %156 : vector<2x4x8x16xf32>
    %158 = math.exp %157 : vector<2x4x8x16xf32>
    %cst_56 = arith.constant dense<0.000000e+00> : vector<2x4x8xf32>
    %159 = vector.multi_reduction <add>, %158, %cst_56 [3] : vector<2x4x8x16xf32> to vector<2x4x8xf32>
    %160 = vector.shape_cast %159 : vector<2x4x8xf32> to vector<2x4x8x1xf32>
    %161 = vector.shape_cast %158 : vector<2x4x8x16xf32> to vector<8x8x16xf32>
    "tpu.trace_start"() <{level = 10 : i32, message = "bts,bsd->btd"}> : () -> ()
    %cst_57 = arith.constant dense<0.000000e+00> : vector<8x8x8xf32>
    %162 = tpu.matmul %161, %148, %cst_57 {dimension_numbers = #tpu.dot_dimension_numbers<[2], [1], [1], [2], [0, 0, 0, 1, 1, 2], [0], [0]>} : vector<8x8x16xf32>, vector<8x16x8xf32>, vector<8x8x8xf32> -> vector<8x8x8xf32>
    "tpu.trace_stop"() : () -> ()
    %163 = vector.shape_cast %160 : vector<2x4x8x1xf32> to vector<8x8x1xf32>
    %164 = tpu.reciprocal %163 {approx = true} : vector<8x8x1xf32> -> vector<8x8x1xf32>
    %165 = vector.broadcast %164 : vector<8x8x1xf32> to vector<8x8x8xf32>
    %166 = arith.mulf %162, %165 : vector<8x8x8xf32>
    %167 = vector.shape_cast %166 : vector<8x8x8xf32> to vector<2x4x8x8xf32>
    %168 = vector.extract_strided_slice %167 {offsets = [0, 0, 0, 0], sizes = [2, 1, 8, 8], strides = [1, 1, 1, 1]} : vector<2x4x8x8xf32> to vector<2x1x8x8xf32>
    %169 = vector.shape_cast %168 : vector<2x1x8x8xf32> to vector<2x8x8xf32>
    %170 = vector.extract_strided_slice %167 {offsets = [0, 1, 0, 0], sizes = [2, 1, 8, 8], strides = [1, 1, 1, 1]} : vector<2x4x8x8xf32> to vector<2x1x8x8xf32>
    %171 = vector.shape_cast %170 : vector<2x1x8x8xf32> to vector<2x8x8xf32>
    %172 = vector.extract_strided_slice %167 {offsets = [0, 2, 0, 0], sizes = [2, 1, 8, 8], strides = [1, 1, 1, 1]} : vector<2x4x8x8xf32> to vector<2x1x8x8xf32>
    %173 = vector.shape_cast %172 : vector<2x1x8x8xf32> to vector<2x8x8xf32>
    %174 = vector.extract_strided_slice %167 {offsets = [0, 3, 0, 0], sizes = [2, 1, 8, 8], strides = [1, 1, 1, 1]} : vector<2x4x8x8xf32> to vector<2x1x8x8xf32>
    %175 = vector.shape_cast %174 : vector<2x1x8x8xf32> to vector<2x8x8xf32>
    %176 = tpu.concatenate %169, %171, %173, %175 in 2 : vector<2x8x8xf32>, vector<2x8x8xf32>, vector<2x8x8xf32>, vector<2x8x8xf32> -> vector<2x8x32xf32>
    %177 = vector.shape_cast %176 : vector<2x8x32xf32> to vector<16x32xf32>
    %c0_58 = arith.constant 0 : index
    %c0_59 = arith.constant 0 : index
    %c0_60 = arith.constant 0 : index
    %178 = vector.load %arg16[%c0_58, %c0_59, %c0_60] : memref<1x32x32xf32, #tpu.memory_space<vmem>>, vector<1x32x32xf32>
    %179 = vector.shape_cast %178 : vector<1x32x32xf32> to vector<32x32xf32>
    %cst_61 = arith.constant dense<0.000000e+00> : vector<16x32xf32>
    %180 = tpu.matmul %177, %179, %cst_61 {dimension_numbers = #tpu.dot_dimension_numbers<[1], [0], [0], [1], [0, 0, 1, 1], [], []>} : vector<16x32xf32>, vector<32x32xf32>, vector<16x32xf32> -> vector<16x32xf32>
    %c0_62 = arith.constant 0 : index
    %c0_63 = arith.constant 0 : index
    %c0_64 = arith.constant 0 : index
    %181 = vector.load %arg17[%c0_62, %c0_63, %c0_64] : memref<1x1x32xf32, #tpu.memory_space<vmem>>, vector<1x1x32xf32>
    %182 = vector.shape_cast %181 : vector<1x1x32xf32> to vector<1x32xf32>
    %183 = vector.broadcast %182 : vector<1x32xf32> to vector<16x32xf32>
    %184 = arith.addf %180, %183 : vector<16x32xf32>
    %185 = arith.addf %104, %184 : vector<16x32xf32>
    %c0_65 = arith.constant 0 : index
    %c0_66 = arith.constant 0 : index
    %c0_67 = arith.constant 0 : index
    %186 = vector.load %arg24[%c0_65, %c0_66, %c0_67] : memref<1x1x32xf32, #tpu.memory_space<vmem>>, vector<1x1x32xf32>
    %187 = vector.shape_cast %186 : vector<1x1x32xf32> to vector<1x32xf32>
    %c0_68 = arith.constant 0 : index
    %c0_69 = arith.constant 0 : index
    %c0_70 = arith.constant 0 : index
    %188 = vector.load %arg25[%c0_68, %c0_69, %c0_70] : memref<1x1x32xf32, #tpu.memory_space<vmem>>, vector<1x1x32xf32>
    %189 = vector.shape_cast %188 : vector<1x1x32xf32> to vector<1x32xf32>
    %cst_71 = arith.constant dense<0.000000e+00> : vector<16xf32>
    %190 = vector.multi_reduction <add>, %185, %cst_71 [1] : vector<16x32xf32> to vector<16xf32>
    %191 = vector.shape_cast %190 : vector<16xf32> to vector<16x1xf32>
    %cst_72 = arith.constant 3.200000e+01 : f32
    %192 = vector.broadcast %cst_72 : f32 to vector<16x1xf32>
    %193 = arith.divf %191, %192 : vector<16x1xf32>
    %194 = vector.broadcast %193 : vector<16x1xf32> to vector<16x32xf32>
    %195 = arith.subf %185, %194 : vector<16x32xf32>
    %196 = arith.mulf %195, %195 : vector<16x32xf32>
    %cst_73 = arith.constant dense<0.000000e+00> : vector<16xf32>
    %197 = vector.multi_reduction <add>, %196, %cst_73 [1] : vector<16x32xf32> to vector<16xf32>
    %198 = vector.shape_cast %197 : vector<16xf32> to vector<16x1xf32>
    %cst_74 = arith.constant 3.200000e+01 : f32
    %199 = vector.broadcast %cst_74 : f32 to vector<16x1xf32>
    %200 = arith.divf %198, %199 : vector<16x1xf32>
    %201 = vector.broadcast %193 : vector<16x1xf32> to vector<16x32xf32>
    %202 = arith.subf %185, %201 : vector<16x32xf32>
    %cst_75 = arith.constant 9.99999974E-6 : f32
    %203 = vector.broadcast %cst_75 : f32 to vector<16x1xf32>
    %204 = arith.addf %200, %203 : vector<16x1xf32>
    %205 = math.rsqrt %204 : vector<16x1xf32>
    %206 = vector.broadcast %205 : vector<16x1xf32> to vector<16x32xf32>
    %207 = arith.mulf %202, %206 : vector<16x32xf32>
    %208 = vector.broadcast %187 : vector<1x32xf32> to vector<16x32xf32>
    %209 = arith.mulf %207, %208 : vector<16x32xf32>
    %210 = vector.broadcast %189 : vector<1x32xf32> to vector<16x32xf32>
    %211 = arith.addf %209, %210 : vector<16x32xf32>
    %c0_76 = arith.constant 0 : index
    %c0_77 = arith.constant 0 : index
    %c0_78 = arith.constant 0 : index
    %212 = vector.load %arg18[%c0_76, %c0_77, %c0_78] : memref<1x32x64xf32, #tpu.memory_space<vmem>>, vector<1x32x64xf32>
    %213 = vector.shape_cast %212 : vector<1x32x64xf32> to vector<32x64xf32>
    %cst_79 = arith.constant dense<0.000000e+00> : vector<16x64xf32>
    %214 = tpu.matmul %211, %213, %cst_79 {dimension_numbers = #tpu.dot_dimension_numbers<[1], [0], [0], [1], [0, 0, 1, 1], [], []>} : vector<16x32xf32>, vector<32x64xf32>, vector<16x64xf32> -> vector<16x64xf32>
    %c0_80 = arith.constant 0 : index
    %c0_81 = arith.constant 0 : index
    %c0_82 = arith.constant 0 : index
    %215 = vector.load %arg19[%c0_80, %c0_81, %c0_82] : memref<1x1x64xf32, #tpu.memory_space<vmem>>, vector<1x1x64xf32>
    %216 = vector.shape_cast %215 : vector<1x1x64xf32> to vector<1x64xf32>
    %217 = vector.broadcast %216 : vector<1x64xf32> to vector<16x64xf32>
    %218 = arith.addf %214, %217 : vector<16x64xf32>
    %cst_83 = arith.constant 0.000000e+00 : f32
    %219 = vector.broadcast %cst_83 : f32 to vector<16x64xf32>
    %220 = arith.maximumf %218, %219 : vector<16x64xf32>
    %c0_84 = arith.constant 0 : index
    %c0_85 = arith.constant 0 : index
    %c0_86 = arith.constant 0 : index
    %221 = vector.load %arg20[%c0_84, %c0_85, %c0_86] : memref<1x64x32xf32, #tpu.memory_space<vmem>>, vector<1x64x32xf32>
    %222 = vector.shape_cast %221 : vector<1x64x32xf32> to vector<64x32xf32>
    %cst_87 = arith.constant dense<0.000000e+00> : vector<16x32xf32>
    %223 = tpu.matmul %220, %222, %cst_87 {dimension_numbers = #tpu.dot_dimension_numbers<[1], [0], [0], [1], [0, 0, 1, 1], [], []>} : vector<16x64xf32>, vector<64x32xf32>, vector<16x32xf32> -> vector<16x32xf32>
    %c0_88 = arith.constant 0 : index
    %c0_89 = arith.constant 0 : index
    %c0_90 = arith.constant 0 : index
    %224 = vector.load %arg21[%c0_88, %c0_89, %c0_90] : memref<1x1x32xf32, #tpu.memory_space<vmem>>, vector<1x1x32xf32>
    %225 = vector.shape_cast %224 : vector<1x1x32xf32> to vector<1x32xf32>
    %226 = vector.broadcast %225 : vector<1x32xf32> to vector<16x32xf32>
    %227 = arith.addf %223, %226 : vector<16x32xf32>
    %228 = arith.addf %211, %227 : vector<16x32xf32>
    %c0_91 = arith.constant 0 : index
    %c0_92 = arith.constant 0 : index
    %c0_93 = arith.constant 0 : index
    %229 = vector.load %arg26[%c0_91, %c0_92, %c0_93] : memref<1x1x32xf32, #tpu.memory_space<vmem>>, vector<1x1x32xf32>
    %230 = vector.shape_cast %229 : vector<1x1x32xf32> to vector<1x32xf32>
    %c0_94 = arith.constant 0 : index
    %c0_95 = arith.constant 0 : index
    %c0_96 = arith.constant 0 : index
    %231 = vector.load %arg27[%c0_94, %c0_95, %c0_96] : memref<1x1x32xf32, #tpu.memory_space<vmem>>, vector<1x1x32xf32>
    %232 = vector.shape_cast %231 : vector<1x1x32xf32> to vector<1x32xf32>
    %cst_97 = arith.constant dense<0.000000e+00> : vector<16xf32>
    %233 = vector.multi_reduction <add>, %228, %cst_97 [1] : vector<16x32xf32> to vector<16xf32>
    %234 = vector.shape_cast %233 : vector<16xf32> to vector<16x1xf32>
    %cst_98 = arith.constant 3.200000e+01 : f32
    %235 = vector.broadcast %cst_98 : f32 to vector<16x1xf32>
    %236 = arith.divf %234, %235 : vector<16x1xf32>
    %237 = vector.broadcast %236 : vector<16x1xf32> to vector<16x32xf32>
    %238 = arith.subf %228, %237 : vector<16x32xf32>
    %239 = arith.mulf %238, %238 : vector<16x32xf32>
    %cst_99 = arith.constant dense<0.000000e+00> : vector<16xf32>
    %240 = vector.multi_reduction <add>, %239, %cst_99 [1] : vector<16x32xf32> to vector<16xf32>
    %241 = vector.shape_cast %240 : vector<16xf32> to vector<16x1xf32>
    %cst_100 = arith.constant 3.200000e+01 : f32
    %242 = vector.broadcast %cst_100 : f32 to vector<16x1xf32>
    %243 = arith.divf %241, %242 : vector<16x1xf32>
    %244 = vector.broadcast %236 : vector<16x1xf32> to vector<16x32xf32>
    %245 = arith.subf %228, %244 : vector<16x32xf32>
    %cst_101 = arith.constant 9.99999974E-6 : f32
    %246 = vector.broadcast %cst_101 : f32 to vector<16x1xf32>
    %247 = arith.addf %243, %246 : vector<16x1xf32>
    %248 = math.rsqrt %247 : vector<16x1xf32>
    %249 = vector.broadcast %248 : vector<16x1xf32> to vector<16x32xf32>
    %250 = arith.mulf %245, %249 : vector<16x32xf32>
    %251 = vector.broadcast %230 : vector<1x32xf32> to vector<16x32xf32>
    %252 = arith.mulf %250, %251 : vector<16x32xf32>
    %253 = vector.broadcast %232 : vector<1x32xf32> to vector<16x32xf32>
    %254 = arith.addf %252, %253 : vector<16x32xf32>
    %c0_102 = arith.constant 0 : index
    %c0_103 = arith.constant 0 : index
    %255 = vector.load %arg33[%c0_102, %c0_103] : memref<16x32xf32, #tpu.memory_space<vmem>>, vector<16x32xf32>
    tpu.vector_store %arg33[%c0_102, %c0_103], %254 {strides = array<i32>} : memref<16x32xf32, #tpu.memory_space<vmem>>, vector<16x32xf32>,
    %c1_i32 = arith.constant 1 : i32
    %256 = arith.cmpi eq, %arg0, %c1_i32 : i32
    %257 = arith.extui %256 : i1 to i32
    %c0_i32_104 = arith.constant 0 : i32
    %258 = arith.cmpi ne, %257, %c0_i32_104 : i32
    scf.if %258 {
      %c0_105 = arith.constant 0 : index
      %c0_106 = arith.constant 0 : index
      %259 = vector.load %arg34[%c0_105, %c0_106] : memref<32x64xf32, #tpu.memory_space<vmem>>, vector<32x64xf32>
      tpu.vector_store %arg34[%c0_105, %c0_106], %118 {strides = array<i32>} : memref<32x64xf32, #tpu.memory_space<vmem>>, vector<32x64xf32>,
      %c0_107 = arith.constant 0 : index
      %c0_108 = arith.constant 0 : index
      %260 = vector.load %arg28[%c0_107, %c0_108] : memref<1x32xf32, #tpu.memory_space<vmem>>, vector<1x32xf32>
      %c0_109 = arith.constant 0 : index
      %c0_110 = arith.constant 0 : index
      %261 = vector.load %arg29[%c0_109, %c0_110] : memref<1x32xf32, #tpu.memory_space<vmem>>, vector<1x32xf32>
      %cst_111 = arith.constant dense<0.000000e+00> : vector<16xf32>
      %262 = vector.multi_reduction <add>, %254, %cst_111 [1] : vector<16x32xf32> to vector<16xf32>
      %263 = vector.shape_cast %262 : vector<16xf32> to vector<16x1xf32>
      %cst_112 = arith.constant 3.200000e+01 : f32
      %264 = vector.broadcast %cst_112 : f32 to vector<16x1xf32>
      %265 = arith.divf %263, %264 : vector<16x1xf32>
      %266 = vector.broadcast %265 : vector<16x1xf32> to vector<16x32xf32>
      %267 = arith.subf %254, %266 : vector<16x32xf32>
      %268 = arith.mulf %267, %267 : vector<16x32xf32>
      %cst_113 = arith.constant dense<0.000000e+00> : vector<16xf32>
      %269 = vector.multi_reduction <add>, %268, %cst_113 [1] : vector<16x32xf32> to vector<16xf32>
      %270 = vector.shape_cast %269 : vector<16xf32> to vector<16x1xf32>
      %cst_114 = arith.constant 3.200000e+01 : f32
      %271 = vector.broadcast %cst_114 : f32 to vector<16x1xf32>
      %272 = arith.divf %270, %271 : vector<16x1xf32>
      %273 = vector.broadcast %265 : vector<16x1xf32> to vector<16x32xf32>
      %274 = arith.subf %254, %273 : vector<16x32xf32>
      %cst_115 = arith.constant 9.99999974E-6 : f32
      %275 = vector.broadcast %cst_115 : f32 to vector<16x1xf32>
      %276 = arith.addf %272, %275 : vector<16x1xf32>
      %277 = math.rsqrt %276 : vector<16x1xf32>
      %278 = vector.broadcast %277 : vector<16x1xf32> to vector<16x32xf32>
      %279 = arith.mulf %274, %278 : vector<16x32xf32>
      %280 = vector.broadcast %260 : vector<1x32xf32> to vector<16x32xf32>
      %281 = arith.mulf %279, %280 : vector<16x32xf32>
      %282 = vector.broadcast %261 : vector<1x32xf32> to vector<16x32xf32>
      %283 = arith.addf %281, %282 : vector<16x32xf32>
      %c0_116 = arith.constant 0 : index
      %c0_117 = arith.constant 0 : index
      %284 = vector.load %arg30[%c0_116, %c0_117] : memref<32x128xf32, #tpu.memory_space<vmem>>, vector<32x128xf32>
      %cst_118 = arith.constant dense<0.000000e+00> : vector<16x128xf32>
      %285 = tpu.matmul %283, %284, %cst_118 {dimension_numbers = #tpu.dot_dimension_numbers<[1], [0], [0], [1], [0, 0, 1, 1], [], []>} : vector<16x32xf32>, vector<32x128xf32>, vector<16x128xf32> -> vector<16x128xf32>
      %c0_119 = arith.constant 0 : index
      %c0_120 = arith.constant 0 : index
      %286 = vector.load %arg31[%c0_119, %c0_120] : memref<1x128xf32, #tpu.memory_space<vmem>>, vector<1x128xf32>
      %287 = vector.broadcast %286 : vector<1x128xf32> to vector<16x128xf32>
      %288 = arith.addf %285, %287 : vector<16x128xf32>
      %289 = arith.negf %288 : vector<16x128xf32>
      %290 = math.exp %289 : vector<16x128xf32>
      %cst_121 = arith.constant 1.000000e+00 : f32
      %291 = vector.broadcast %cst_121 : f32 to vector<16x128xf32>
      %292 = arith.addf %291, %290 : vector<16x128xf32>
      %293 = arith.divf %291, %292 : vector<16x128xf32>
      %c0_122 = arith.constant 0 : index
      %c0_123 = arith.constant 0 : index
      %294 = vector.load %arg5[%c0_122, %c0_123] : memref<16x1xf32, #tpu.memory_space<vmem>>, vector<16x1xf32>
      %295 = vector.broadcast %294 : vector<16x1xf32> to vector<16x128xf32>
      %296 = arith.mulf %293, %295 : vector<16x128xf32>
      %c0_124 = arith.constant 0 : index
      %c0_125 = arith.constant 0 : index
      %297 = vector.load %arg32[%c0_124, %c0_125] : memref<16x128xf32, #tpu.memory_space<vmem>>, vector<16x128xf32>
      tpu.vector_store %arg32[%c0_124, %c0_125], %296 {strides = array<i32>} : memref<16x128xf32, #tpu.memory_space<vmem>>, vector<16x128xf32>,
    } else {
    }
    return
  }
  func.func @transform_0(%arg0: i32) -> (i32, i32) {
    %c0_i32 = arith.constant 0 : i32
    %c0_i32_0 = arith.constant 0 : i32
    %c0_i32_1 = arith.constant 0 : i32
    return %c0_i32, %c0_i32_0 : i32, i32
  }
  func.func @transform_1(%arg0: i32) -> (i32, i32) {
    %c0_i32 = arith.constant 0 : i32
    %c0_i32_0 = arith.constant 0 : i32
    %c0_i32_1 = arith.constant 0 : i32
    return %c0_i32, %c0_i32_0 : i32, i32
  }
  func.func @transform_2(%arg0: i32) -> (i32, i32, i32, i32) {
    %c0_i32 = arith.constant 0 : i32
    %c0_i32_0 = arith.constant 0 : i32
    %c0_i32_1 = arith.constant 0 : i32
    %c0_i32_2 = arith.constant 0 : i32
    %c0_i32_3 = arith.constant 0 : i32
    return %c0_i32, %c0_i32_0, %c0_i32_1, %c0_i32_2 : i32, i32, i32, i32
  }
  func.func @transform_3(%arg0: i32) -> (i32, i32, i32, i32) {
    %c0_i32 = arith.constant 0 : i32
    %c0_i32_0 = arith.constant 0 : i32
    %c0_i32_1 = arith.constant 0 : i32
    %c0_i32_2 = arith.constant 0 : i32
    %c0_i32_3 = arith.constant 0 : i32
    return %c0_i32, %c0_i32_0, %c0_i32_1, %c0_i32_2 : i32, i32, i32, i32
  }
  func.func @transform_4(%arg0: i32) -> (i32, i32) {
    %c0_i32 = arith.constant 0 : i32
    %c0_i32_0 = arith.constant 0 : i32
    %c0_i32_1 = arith.constant 0 : i32
    return %c0_i32, %c0_i32_0 : i32, i32
  }
  func.func @transform_5(%arg0: i32) -> (i32, i32) {
    %c0_i32 = arith.constant 0 : i32
    %c0_i32_0 = arith.constant 0 : i32
    %c0_i32_1 = arith.constant 0 : i32
    return %c0_i32, %c0_i32_0 : i32, i32
  }
  func.func @transform_6(%arg0: i32) -> (i32, i32) {
    %c0_i32 = arith.constant 0 : i32
    %c0_i32_0 = arith.constant 0 : i32
    %c0_i32_1 = arith.constant 0 : i32
    return %c0_i32, %c0_i32_0 : i32, i32
  }
  func.func @transform_7(%arg0: i32) -> (i32, i32, i32) {
    %c0_i32 = arith.constant 0 : i32
    %c0_i32_0 = arith.constant 0 : i32
    %c0_i32_1 = arith.constant 0 : i32
    return %arg0, %c0_i32, %c0_i32_0 : i32, i32, i32
  }
  func.func @transform_8(%arg0: i32) -> (i32, i32, i32) {
    %c0_i32 = arith.constant 0 : i32
    %c0_i32_0 = arith.constant 0 : i32
    %c0_i32_1 = arith.constant 0 : i32
    return %arg0, %c0_i32, %c0_i32_0 : i32, i32, i32
  }
  func.func @transform_9(%arg0: i32) -> (i32, i32, i32) {
    %c0_i32 = arith.constant 0 : i32
    %c0_i32_0 = arith.constant 0 : i32
    %c0_i32_1 = arith.constant 0 : i32
    return %arg0, %c0_i32, %c0_i32_0 : i32, i32, i32
  }
  func.func @transform_10(%arg0: i32) -> (i32, i32, i32) {
    %c0_i32 = arith.constant 0 : i32
    %c0_i32_0 = arith.constant 0 : i32
    %c0_i32_1 = arith.constant 0 : i32
    return %arg0, %c0_i32, %c0_i32_0 : i32, i32, i32
  }
  func.func @transform_11(%arg0: i32) -> (i32, i32, i32) {
    %c0_i32 = arith.constant 0 : i32
    %c0_i32_0 = arith.constant 0 : i32
    %c0_i32_1 = arith.constant 0 : i32
    return %arg0, %c0_i32, %c0_i32_0 : i32, i32, i32
  }
  func.func @transform_12(%arg0: i32) -> (i32, i32, i32) {
    %c0_i32 = arith.constant 0 : i32
    %c0_i32_0 = arith.constant 0 : i32
    %c0_i32_1 = arith.constant 0 : i32
    return %arg0, %c0_i32, %c0_i32_0 : i32, i32, i32
  }
  func.func @transform_13(%arg0: i32) -> (i32, i32, i32) {
    %c0_i32 = arith.constant 0 : i32
    %c0_i32_0 = arith.constant 0 : i32
    %c0_i32_1 = arith.constant 0 : i32
    return %arg0, %c0_i32, %c0_i32_0 : i32, i32, i32
  }
  func.func @transform_14(%arg0: i32) -> (i32, i32, i32) {
    %c0_i32 = arith.constant 0 : i32
    %c0_i32_0 = arith.constant 0 : i32
    %c0_i32_1 = arith.constant 0 : i32
    return %arg0, %c0_i32, %c0_i32_0 : i32, i32, i32
  }
  func.func @transform_15(%arg0: i32) -> (i32, i32, i32) {
    %c0_i32 = arith.constant 0 : i32
    %c0_i32_0 = arith.constant 0 : i32
    %c0_i32_1 = arith.constant 0 : i32
    return %arg0, %c0_i32, %c0_i32_0 : i32, i32, i32
  }
  func.func @transform_16(%arg0: i32) -> (i32, i32, i32) {
    %c0_i32 = arith.constant 0 : i32
    %c0_i32_0 = arith.constant 0 : i32
    %c0_i32_1 = arith.constant 0 : i32
    return %arg0, %c0_i32, %c0_i32_0 : i32, i32, i32
  }
  func.func @transform_17(%arg0: i32) -> (i32, i32, i32) {
    %c0_i32 = arith.constant 0 : i32
    %c0_i32_0 = arith.constant 0 : i32
    %c0_i32_1 = arith.constant 0 : i32
    return %arg0, %c0_i32, %c0_i32_0 : i32, i32, i32
  }
  func.func @transform_18(%arg0: i32) -> (i32, i32, i32) {
    %c0_i32 = arith.constant 0 : i32
    %c0_i32_0 = arith.constant 0 : i32
    %c0_i32_1 = arith.constant 0 : i32
    return %arg0, %c0_i32, %c0_i32_0 : i32, i32, i32
  }
  func.func @transform_19(%arg0: i32) -> (i32, i32, i32) {
    %c0_i32 = arith.constant 0 : i32
    %c0_i32_0 = arith.constant 0 : i32
    %c0_i32_1 = arith.constant 0 : i32
    return %arg0, %c0_i32, %c0_i32_0 : i32, i32, i32
  }
  func.func @transform_20(%arg0: i32) -> (i32, i32, i32) {
    %c0_i32 = arith.constant 0 : i32
    %c0_i32_0 = arith.constant 0 : i32
    %c0_i32_1 = arith.constant 0 : i32
    return %arg0, %c0_i32, %c0_i32_0 : i32, i32, i32
  }
  func.func @transform_21(%arg0: i32) -> (i32, i32, i32) {
    %c0_i32 = arith.constant 0 : i32
    %c0_i32_0 = arith.constant 0 : i32
    %c0_i32_1 = arith.constant 0 : i32
    return %arg0, %c0_i32, %c0_i32_0 : i32, i32, i32
  }
  func.func @transform_22(%arg0: i32) -> (i32, i32, i32) {
    %c0_i32 = arith.constant 0 : i32
    %c0_i32_0 = arith.constant 0 : i32
    %c0_i32_1 = arith.constant 0 : i32
    return %arg0, %c0_i32, %c0_i32_0 : i32, i32, i32
  }
  func.func @transform_23(%arg0: i32) -> (i32, i32, i32) {
    %c0_i32 = arith.constant 0 : i32
    %c0_i32_0 = arith.constant 0 : i32
    %c0_i32_1 = arith.constant 0 : i32
    return %arg0, %c0_i32, %c0_i32_0 : i32, i32, i32
  }
  func.func @transform_24(%arg0: i32) -> (i32, i32, i32) {
    %c0_i32 = arith.constant 0 : i32
    %c0_i32_0 = arith.constant 0 : i32
    %c0_i32_1 = arith.constant 0 : i32
    return %arg0, %c0_i32, %c0_i32_0 : i32, i32, i32
  }
  func.func @transform_25(%arg0: i32) -> (i32, i32, i32) {
    %c0_i32 = arith.constant 0 : i32
    %c0_i32_0 = arith.constant 0 : i32
    %c0_i32_1 = arith.constant 0 : i32
    return %arg0, %c0_i32, %c0_i32_0 : i32, i32, i32
  }
  func.func @transform_26(%arg0: i32) -> (i32, i32, i32) {
    %c0_i32 = arith.constant 0 : i32
    %c0_i32_0 = arith.constant 0 : i32
    %c0_i32_1 = arith.constant 0 : i32
    return %arg0, %c0_i32, %c0_i32_0 : i32, i32, i32
  }
  func.func @transform_27(%arg0: i32) -> (i32, i32) {
    %c0_i32 = arith.constant 0 : i32
    %c0_i32_0 = arith.constant 0 : i32
    %c0_i32_1 = arith.constant 0 : i32
    return %c0_i32, %c0_i32_0 : i32, i32
  }
  func.func @transform_28(%arg0: i32) -> (i32, i32) {
    %c0_i32 = arith.constant 0 : i32
    %c0_i32_0 = arith.constant 0 : i32
    %c0_i32_1 = arith.constant 0 : i32
    return %c0_i32, %c0_i32_0 : i32, i32
  }
  func.func @transform_29(%arg0: i32) -> (i32, i32) {
    %c0_i32 = arith.constant 0 : i32
    %c0_i32_0 = arith.constant 0 : i32
    %c0_i32_1 = arith.constant 0 : i32
    return %c0_i32, %c0_i32_0 : i32, i32
  }
  func.func @transform_30(%arg0: i32) -> (i32, i32) {
    %c0_i32 = arith.constant 0 : i32
    %c0_i32_0 = arith.constant 0 : i32
    %c0_i32_1 = arith.constant 0 : i32
    return %c0_i32, %c0_i32_0 : i32, i32
  }
  func.func @transform_31(%arg0: i32) -> (i32, i32) {
    %c0_i32 = arith.constant 0 : i32
    %c0_i32_0 = arith.constant 0 : i32
    %c0_i32_1 = arith.constant 0 : i32
    return %c0_i32, %c0_i32_0 : i32, i32
  }
  func.func @transform_32(%arg0: i32) -> (i32, i32) {
    %c0_i32 = arith.constant 0 : i32
    %c0_i32_0 = arith.constant 0 : i32
    %c0_i32_1 = arith.constant 0 : i32
    return %c0_i32, %c0_i32_0 : i32, i32
  }
  func.func @transform_33(%arg0: i32) -> (i32, i32) {
    %c0_i32 = arith.constant 0 : i32
    %c0_i32_0 = arith.constant 0 : i32
    %c0_i32_1 = arith.constant 0 : i32
    return %c0_i32, %c0_i32_0 : i32, i32
  }
}

</mosaic_0001>

<bundles_post_ra>
// kernel: _kpn2_forward_impl.1
= control target key start
LH: loop header
LB: loop body
LE: loop exit
PB: predicated region body
PF: predicated region fallthrough
CT: control target
= control target key end

     0   :  { %s6450_s6 = smov 1   ;;  %s6451_s10 = smov 2   ;;  %s7247_s0 = inlined_call_operand.smem [shape: u32[34], index: -1, kind: input, shape index: {}] }
   0x1   :  { %s6505_s5 = sld [smem:[%s7247_s0]]   ;;  %s6452_s14 = smov 3  }
   0x2   :  { %s6510_s9 = sld [smem:[%s7247_s0 + %s6450_s6]]   ;;  %s6453_s18 = smov 4  }
   0x3   :  { %s6515_s13 = sld [smem:[%s7247_s0 + %s6451_s10]]   ;;  %s6454_s22 = smov 5  }
   0x4   :  { %s6520_s17 = sld [smem:[%s7247_s0 + %s6452_s14]]   ;;  %s6455_s26 = smov 6  }
   0x5   :  { %s6525_s21 = sld [smem:[%s7247_s0 + %s6453_s18]]   ;;  %s6456_s30 = smov 7  }
   0x6   :  { %s6530_s25 = sld [smem:[%s7247_s0 + %s6454_s22]]   ;;  %s6457_s4 = smov 8  }
   0x7   :  { %7263 = sst [smem:[#allocation5_spill]] %s6505_s5  ;;  %s6458_s10 = smov 9  }
   0x8   :  { %7264 = sst [smem:[#allocation6_spill]] %s6510_s9  ;;  %s6459_s15 = smov 10  }
   0x9   :  { %7265 = sst [smem:[#allocation7_spill]] %s6515_s13  ;;  %s6460_s20 = smov 11  }
   0xa   :  { %7266 = sst [smem:[#allocation8_spill]] %s6520_s17  ;;  %s6462_s1 = smov 13  }
   0xb   :  { %7267 = sst [smem:[#allocation9_spill]] %s6525_s21  ;;  %s6463_s7 = smov 14  }
   0xc   :  { %7268 = sst [smem:[#allocation10_spill]] %s6530_s25  ;;  %s6465_s22 = smov 16  }
   0xd   :  { %s6535_s29 = sld [smem:[%s7247_s0 + %s6455_s26]]   ;;  %s6461_s26 = smov 12  }
   0xe   :  { %s6540_s3 = sld [smem:[%s7247_s0 + %s6456_s30]]   ;;  %s6466_s28 = smov 17  }
   0xf   :  { %s6545_s8 = sld [smem:[%s7247_s0 + %s6457_s4]]  }
  0x10   :  { %s6550_s14 = sld [smem:[%s7247_s0 + %s6458_s10]]  }
  0x11   :  { %s6555_s19 = sld [smem:[%s7247_s0 + %s6459_s15]]   ;;  %s6464_s15 = smov 15  }
  0x12   :  { %s6560_s24 = sld [smem:[%s7247_s0 + %s6460_s20]]  }
  0x13   :  { %7269 = sst [smem:[#allocation11_spill]] %s6535_s29 }
  0x14   :  { %7270 = sst [smem:[#allocation12_spill]] %s6540_s3 }
  0x15   :  { %7271 = sst [smem:[#allocation13_spill]] %s6545_s8 }
  0x16   :  { %7272 = sst [smem:[#allocation14_spill]] %s6550_s14 }
  0x17   :  { %7273 = sst [smem:[#allocation15_spill]] %s6555_s19 }
  0x18   :  { %7274 = sst [smem:[#allocation16_spill]] %s6560_s24 }
  0x19   :  { %s6565_s30 = sld [smem:[%s7247_s0 + %s6461_s26]]  }
  0x1a   :  { %s6570_s6 = sld [smem:[%s7247_s0 + %s6462_s1]]  }
  0x1b   :  { %s6575_s12 = sld [smem:[%s7247_s0 + %s6463_s7]]   ;;  %s6467_s7 = smov 18  }
  0x1c   :  { %s6580_s20 = sld [smem:[%s7247_s0 + %s6464_s15]]   ;;  %s6468_s15 = smov 19  }
  0x1d   :  { %s6585_s27 = sld [smem:[%s7247_s0 + %s6465_s22]]   ;;  %s6469_s22 = smov 20  }
  0x1e   :  { %s6590_s4 = sld [smem:[%s7247_s0 + %s6466_s28]]   ;;  %s6470_s28 = smov 21  }
  0x1f   :  { %7275 = sst [smem:[#allocation17_spill]] %s6565_s30 }
  0x20   :  { %7276 = sst [smem:[#allocation18_spill]] %s6570_s6 }
  0x21   :  { %s6595_s21 = sld [smem:[%s7247_s0 + %s6467_s7]]   ;;  %s6471_s7 = smov 22  }
  0x22   :  { %7277 = sst [smem:[#allocation19_spill]] %s6580_s20 }
  0x23   :  { %s6600_s17 = sld [smem:[%s7247_s0 + %s6468_s15]]   ;;  %s6472_s15 = smov 23  }
  0x24   :  { %s6605_s9 = sld [smem:[%s7247_s0 + %s6469_s22]]   ;;  %s6473_s22 = smov 24  }
  0x25   :  { %s6610_s13 = sld [smem:[%s7247_s0 + %s6470_s28]]   ;;  %s6474_s28 = smov 25  }
  0x26   :  { %s6615_s29 = sld [smem:[%s7247_s0 + %s6471_s7]]   ;;  %s6475_s7 = smov 26  }
  0x27   :  { %s6620_s5 = sld [smem:[%s7247_s0 + %s6472_s15]]   ;;  %s6476_s15 = smov 27  }
  0x28   :  { %s6625_s25 = sld [smem:[%s7247_s0 + %s6473_s22]]   ;;  %s6477_s22 = smov 28  }
  0x2b   :  { %7278 = sst [smem:[#allocation20_spill]] %s6610_s13 }
  0x2c   :  { %7279 = sst [smem:[#allocation21_spill]] %s6615_s29 }
  0x2d   :  { %7280 = sst [smem:[#allocation22_spill]] %s6620_s5 }
  0x2e   :  { %7281 = sst [smem:[#allocation23_spill]] %s6625_s25 }
  0x2f   :  { %s6630_s13 = sld [smem:[%s7247_s0 + %s6474_s28]]   ;;  %s6478_s28 = smov 29  }
  0x30   :  { %s6635_s29 = sld [smem:[%s7247_s0 + %s6475_s7]]   ;;  %s6479_s7 = smov 30  }
  0x31   :  { %s6640_s5 = sld [smem:[%s7247_s0 + %s6476_s15]]   ;;  %s6480_s15 = smov 31  }
  0x32   :  { %s6645_s25 = sld [smem:[%s7247_s0 + %s6477_s22]]   ;;  %s6481_s22 = smov 32  }
  0x35   :  { %7282 = sst [smem:[#allocation24_spill]] %s6630_s13 }
  0x36   :  { %7283 = sst [smem:[#allocation25_spill]] %s6635_s29 }
  0x37   :  { %7284 = sst [smem:[#allocation26_spill]] %s6640_s5 }
  0x38   :  { %7285 = sst [smem:[#allocation27_spill]] %s6645_s25 }
  0x39   :  { %s6650_s13 = sld [smem:[%s7247_s0 + %s6478_s28]]   ;;  %s6482_s28 = smov 33  }
  0x3a   :  { %s6655_s29 = sld [smem:[%s7247_s0 + %s6479_s7]]  }
  0x3b   :  { %s6660_s5 = sld [smem:[%s7247_s0 + %s6480_s15]]  }
  0x3c   :  { %s6665_s25 = sld [smem:[%s7247_s0 + %s6481_s22]]  }
  0x3f   :  { %7286 = sst [smem:[#allocation28_spill]] %s6650_s13 }
  0x40   :  { %7287 = sst [smem:[#allocation29_spill]] %s6655_s29 }
  0x41   :  { %7288 = sst [smem:[#allocation30_spill]] %s6660_s5 }
  0x42   :  { %7289 = sst [smem:[#allocation31_spill]] %s6665_s25 }
  0x43   :  { %s6670_s13 = sld [smem:[%s7247_s0 + %s6482_s28]]  }
  0x49   :  { %7290 = sst [smem:[#allocation32_spill]] %s6670_s13 }
  0x4a   :  { %73 = vsyncpa [#allocation3], 0  ;;  %s6672_s7 = smov 0  }
  0x4b LB: > { %7291 = sst [smem:[#allocation33_spill]] %s6448_s7  ;;  %s6678_s10 = sadd.s32 4294967295, %s6448_s7   ;;  %s6448_s7 = sphi %s6672_s7, %s79_s7  }
  0x4c   : > { %7292 = sst [smem:[#allocation34_spill]] %s6678_s10  ;;  %p5498_p0 = scmp.ge.s32.totalorder %s6448_s7, 1 }
  0x4d   : > { %p1076_p1 = scmp.lt.s32.totalorder %s6448_s7, 3 }
  0x4f   : > { %p1077_p2 = pnand %p5498_p0, %p1076_p1 }
  0x51   : > { %1080 = sbr.rel (%p1077_p2) target bundleno = 4991 (0x137f), region = 144 }
  0x58   : > { %s7294_s3 = sld [smem:[#allocation12_spill]]  ;;  %s7295_s14 = sld [smem:[#allocation14_spill]] }
  0x59   : > { %s7297_s24 = sld [smem:[#allocation16_spill]]  ;;  %s7299_s6 = sld [smem:[#allocation18_spill]] }
  0x5a   : > { %s7300_s20 = sld [smem:[#allocation19_spill]]  ;;  %p1224_p3 = scmp.lt.s32.totalorder %s6678_s10, 1 }
  0x5b   : > { %s7301_s15 = sld [smem:[#allocation20_spill]]  ;;  %s7302_s18 = sld [smem:[#allocation21_spill]] }
  0x5c   : > { %s6684_s0 = scalar_select %p1224_p3, %s6678_s10, 1 }
  0x5d   : > { %s7304_s23 = sld [smem:[#allocation22_spill]]  ;;  %s7306_s28 = sld [smem:[#allocation23_spill]] }
  0x5e   : > { %s5623_s11 = sshll.u32 %s6684_s0, 5  ;;  %s7307_s2 = sld [smem:[#allocation24_spill]] }
  0x5f   : > { %s6690_s22 = scalar_lea.vmem %s7294_s3, %s5623_s11  ;;  %s6693_s26 = scalar_lea.vmem %s7295_s14, %s5623_s11 }
  0x60   : > { %7303 = sst [smem:[#allocation35_spill]] %s6690_s22  ;;  %s6698_s7 = scalar_lea.vmem %s7297_s24, %s5623_s11 }
  0x61   : > { %7305 = sst [smem:[#allocation36_spill]] %s6693_s26  ;;  %s7309_s25 = sld [smem:[#allocation25_spill]] }
  0x62   : > { %7308 = sst [smem:[#allocation37_spill]] %s6698_s7  ;;  %s6703_s29 = scalar_lea.vmem %s7299_s6, %s5623_s11 }
  0x63   : > { %s6708_s13 = scalar_lea.vmem %s7300_s20, %s5623_s11  ;;  %s6713_s8 = scalar_lea.vmem %s6590_s4, %s5623_s11 }
  0x64   : > { %s1271_s14 = scalar_lea.vmem %s6595_s21, %s6684_s0  ;;  %s5629_s26 = sshll.u32 %s6684_s0, 6 }
  0x65   : > { %s6719_s22 = scalar_lea.vmem %s6600_s17, %s5629_s26  ;;  %s1279_s1 = scalar_lea.vmem %s6605_s9, %s6684_s0 }
  0x66   : > { %s1282_s19 = scalar_lea.vmem %s7301_s15, %s6684_s0  ;;  %s1285_s10 = scalar_lea.vmem %s7302_s18, %s6684_s0 }
  0x67   : > { %s1288_s24 = scalar_lea.vmem %s7304_s23, %s6684_s0  ;;  %s1291_s7 = scalar_lea.vmem %s7306_s28, %s6684_s0 }
  0x68   : > { %s1294_s5 = scalar_lea.vmem %s7307_s2, %s6684_s0  ;;  %s1297_s30 = scalar_lea.vmem %s7309_s25, %s6684_s0 }
  0x69   : > { %s7310_s6 = sld [smem:[#allocation34_spill]] }
  0x6f   : > { %p5513_p4 = scmp.ne.s32.totalorder %s7310_s6, 0 }
  0x70   : > { %s7311_s16 = sld [smem:[#allocation10_spill]] (!%p5513_p4)  ;;  %s7312_s20 = sld [smem:[#allocation5_spill]] (!%p5513_p4)  ;;  %vm1319_vm0 = vcmask (!%p5513_p4), 1042432   ;;  %vm1312_vm1 = vcmask (!%p5513_p4), 23552   ;;  %vm1398_vm2 = vcmask (!%p5513_p4), 261120  }
  0x71   : > { %1301 = sbr.rel (%p5513_p4) target bundleno = 337 (0x151), region = 148  ;;  %s7313_s3 = sld [smem:[#allocation11_spill]] (!%p5513_p4) }
  0x76   : > { %v1304_v0 = vld [vmem:[%s7311_s16] sm:$0x7] (!%p5513_p4)  ;;  %v1303_v2 = vld [vmem:[%s7312_s20 + $0x8] sm:$0xff] (!%p5513_p4) }
  0x77   : > { %v1302_v1 = vld [vmem:[%s7312_s20] sm:$0xff] (!%p5513_p4)  ;;  %5767 = vmatprep.subr.msk.mxu0 (!%p5513_p4), %vm1319_vm0, %v1304_v0 }
  0x78   : > { %5769 = vmatprep.mubr.msk.f32.mxu0 %vm1312_vm1, %v1302_v1  ;;  %5768 = vmatpush3.msk.msra.mxu0 %vm1319_vm0, %v1304_v0  ;;  %v5514_v3 = vld [vmem:[%s7313_s3] ss:$0 sm:$0xff] }
  0x79   : > { %5770 = vmatmul.mubr.msk.f32.vlgmr.msra.gmra.mrb[0].mxu0 %vm1312_vm1, %v1303_v2 }
 0x14c   : > { %v5771_v4 = vpop.f32.mrb[0].mxu0 }
 0x14d   : > { %v1395_v5 = vadd.f32 %v5771_v4, %v5514_v3  ;;  %v1389_v6 = vpop.f32.mrb[1].mxu0 }
 0x14e   : > { %v1390_v7 = vadd.f32 %v5514_v3, %v1389_v6 }
 0x14f   : > { %1400 = vst.msk [vmem:[#allocation2 + $0x8] sm:$0xff] %vm1398_vm2, %v1395_v5 }
 0x150   : > { %1399 = vst.msk [vmem:[#allocation2] sm:$0xff] %vm1398_vm2, %v1390_v7 }
 0x151 PF: > { %s7314_s25 = sld [smem:[#allocation35_spill]]  ;;  %s7315_s6 = sld [smem:[#allocation13_spill]]  ;;  %vm1418_vm3 = vcmask 261120   ;;  %v6483_v18 = vmov 0.0   ;;  %vm6486_vm4 = vmmov 0   ;;  %vm1518_vm5 = vcmask 64512  }
 0x152   : > { %5793 = vmatprep.subr.mxu0 %v6483_v18  ;;  %s6484_s11 = smov 104   ;;  %s6485_s15 = smov 120   ;;  %5795 = vmatprep.mubr.msk.f32.mxu0 %vm6486_vm4, %v6483_v18  ;;  %vm2855_vm6 = vcmask 130048   ;;  %vm2858_vm7 = vcmask 195584   ;;  %vm6967_vm8 = vmpackc.low %vm1518_vm5, %vm1518_vm5  ;;  %vm4911_vm9 = vcmask 523264  }
 0x153   : > { %s6487_s16 = smov 112   ;;  %s6488_s18 = smov 96  }
 0x154   : > { %s6489_s23 = smov 64   ;;  %s7317_s26 = sld [smem:[#allocation7_spill]] }
 0x155   : > { %s7318_s28 = sld [smem:[#allocation36_spill]]  ;;  %s6490_s2 = smov 8  }
 0x156   : > { %v6748_v15 = vld [vmem:[#allocation2 + $0x8] sm:$0xff] }
 0x157   : > { %v1407_v8 = vld [vmem:[%s7314_s25] sm:$0xff]  ;;  %v1408_v9 = vld [vmem:[%s7314_s25 + $0x8] sm:$0xff]  ;;  %v1409_v10 = vld [vmem:[%s7314_s25 + $0x10] sm:$0xff]  ;;  %s7316_s3 = scalar_lea.vmem %s7315_s6, %s6684_s0  ;;  %s6492_s6 = smov 24  }
 0x158   : > { %v6063_v11 = vpack.c.bf16 %v1408_v9, %v1407_v8  ;;  %v1410_v12 = vld [vmem:[%s7314_s25 + $0x18] sm:$0xff]  ;;  %v6744_v13 = vld [vmem:[#allocation2] sm:$0xff]  ;;  %s6491_s25 = smov 16  }
 0x159   : > { %v6067_v14 = vpack.c.bf16 %v1410_v12, %v1409_v10  ;;  %5780 = vmatprep.mubr.msk.f32.mxu1 %vm1418_vm3, %v6744_v13  ;;  %v5518_v16 = vld [vmem:[%s7316_s3] ss:$0 sm:$0xff]  ;;  %s7319_s3 = sld [smem:[#allocation15_spill]] }
 0x15a   : > { %6064 = vmatprep.subr.bf16.mxu1 %v6063_v11  ;;  %v1514_v39 = vld [vmem:[%s7317_s26] sm:$0xff]  ;;  %v1515_v53 = vld [vmem:[%s7317_s26 + $0x8] sm:$0xff] }
 0x15b   : > { %6066 = vmatpush3.bf16.msra.mxu1 %v6063_v11 }
 0x15c   : > { %6068 = vmatprep.subr.bf16.mxu1 %v6067_v14 }
 0x15f   : > { %6070 = vmatpush3.bf16.msra.mxu1 %v6067_v14 }
 0x160   : > { %5783 = vmatprep.subr.mxu1 %v6483_v18 }
 0x162   : > { %5781 = vmatmul.mubr.msk.f32.vlgmr.msra.gmra.mrb[0].mxu1 %vm1418_vm3, %v6748_v15 }
 0x163   : > { %5785 = vmatprep.mubr.msk.f32.mxu1 %vm6486_vm4, %v6483_v18 }
 0x235   : > { %v5782_v17 = vpop.f32.mrb[0].mxu1 }
 0x236   : > { %v1491_v19 = vpop.f32.mrb[1].mxu1  ;;  %v1497_v21 = vadd.f32 %v5782_v17, %v5518_v16 }
 0x237   : > { %v1492_v20 = vadd.f32 %v5518_v16, %v1491_v19 }
 0x239   : > { %1510 = vrot.lane.b32.xlu1 %v1492_v20, %s6484_s11  ;;  %1502 = vrot.lane.b32.xlu0 %v1492_v20, %s6485_s15 }
 0x23d   : > { %1504 = vrot.lane.b32.xlu1 %v1497_v21, %s6485_s15  ;;  %1506 = vrot.lane.b32.xlu0 %v1492_v20, %s6487_s16 }
 0x241   : > { %1512 = vrot.lane.b32.xlu1 %v1497_v21, %s6484_s11  ;;  %1508 = vrot.lane.b32.xlu0 %v1497_v21, %s6487_s16 }
 0x245   : > { %1516 = vrot.lane.b32.xlu0 %v1492_v20, %s6488_s18 }
 0x2ab   : > { %v1511_v22 = vpop.permute.xlu1 %1510  ;;  %v1503_v23 = vpop.permute.xlu0 %1502 }
 0x2ac   : > { %1593 = vrot.lane.b32.xlu1 %v1503_v23, %s6488_s18 }
 0x2af   : > { %v1507_v24 = vpop.permute.xlu0 %1506  ;;  %v1505_v25 = vpop.permute.xlu1 %1504 }
 0x2b0   : > { %1745 = vrot.lane.b32.xlu1 %v1511_v22, %s6488_s18  ;;  %1669 = vrot.lane.b32.xlu0 %v1507_v24, %s6488_s18 }
 0x2b3   : > { %v6771_v26 = vpop.permute.xlu0 %1508  ;;  %v6775_v27 = vpop.permute.xlu1 %1512 }
 0x2b4   : > { %1897 = vrot.lane.b32.xlu1 %v1505_v25, %s6488_s18  ;;  %1821 = vrot.lane.b32.xlu0 %v1497_v21, %s6488_s18 }
 0x2b7   : > { %v1517_v28 = vpop.permute.xlu0 %1516 }
 0x2b8   : > { %2049 = vrot.lane.b32.xlu1 %v6775_v27, %s6488_s18  ;;  %1973 = vrot.lane.b32.xlu0 %v6771_v26, %s6488_s18 }
 0x2b9   : > { %5784 = vmatpush3.xpose.msk.msra.mxu1 %vm1518_vm5, %v1517_v28 }
 0x2ba   : > { %5788 = vmatprep.subr.mxu1 %v6483_v18 }
 0x2bc   : > { %5786 = vmatmul.mubr.msk.f32.vlgmr.msra.gmra.mrb[2].mxu1 %vm1518_vm5, %v1492_v20  ;;  %2205 = vrot.lane.b32.xlu1 %v1492_v20, %s6489_s23 }
 0x2bd   : > { %2509 = vrot.lane.b32.xlu0 %v1497_v21, %s6489_s23  ;;  %5790 = vmatprep.mubr.msk.f32.mxu1 %vm6486_vm4, %v6483_v18 }
 0x2c0   : > { %2585 = vrot.lane.b32.xlu1 %v1505_v25, %s6489_s23 }
 0x2c1   : > { %2281 = vrot.lane.b32.xlu0 %v1503_v23, %s6489_s23 }
 0x2c4   : > { %2357 = vrot.lane.b32.xlu1 %v1507_v24, %s6489_s23 }
 0x2c8   : > { %2433 = vrot.lane.b32.xlu1 %v1511_v22, %s6489_s23 }
 0x31e   : > { %v1594_v29 = vpop.permute.xlu1 %1593 }
 0x31f   : > { %5789 = vmatpush3.xpose.msk.msra.mxu1 %vm1518_vm5, %v1594_v29 }
 0x320   : > { %5798 = vmatprep.subr.mxu1 %v6483_v18 }
 0x322   : > { %v1746_v30 = vpop.permute.xlu1 %1745  ;;  %5791 = vmatmul.mubr.msk.f32.vlgmr.msra.gmra.mrb[4].mxu1 %vm1518_vm5, %v1503_v23  ;;  %v1670_v31 = vpop.permute.xlu0 %1669 }
 0x323   : > { %5794 = vmatpush3.xpose.msk.msra.mxu0 %vm1518_vm5, %v1670_v31  ;;  %5799 = vmatpush3.xpose.msk.msra.mxu1 %vm1518_vm5, %v1746_v30 }
 0x324   : > { %5800 = vmatprep.mubr.msk.f32.mxu1 %vm6486_vm4, %v6483_v18  ;;  %5803 = vmatprep.subr.mxu0 %v6483_v18 }
 0x325   : > { %5808 = vmatprep.subr.mxu1 %v6483_v18 }
 0x326   : > { %v1898_v32 = vpop.permute.xlu1 %1897  ;;  %5796 = vmatmul.mubr.msk.f32.vlgmr.msra.gmra.mrb[0].mxu0 %vm1518_vm5, %v1507_v24  ;;  %5801 = vmatmul.mubr.msk.f32.vlgmr.msra.gmra.mrb[6].mxu1 %vm1518_vm5, %v1511_v22  ;;  %v1822_v33 = vpop.permute.xlu0 %1821 }
 0x327   : > { %5804 = vmatpush3.xpose.msk.msra.mxu0 %vm1518_vm5, %v1822_v33  ;;  %5809 = vmatpush3.xpose.msk.msra.mxu1 %vm1518_vm5, %v1898_v32 }
 0x328   : > { %5805 = vmatprep.mubr.msk.f32.mxu0 %vm6486_vm4, %v6483_v18  ;;  %5810 = vmatprep.mubr.msk.f32.mxu1 %vm6486_vm4, %v6483_v18 }
 0x329   : > { %5813 = vmatprep.subr.mxu0 %v6483_v18  ;;  %5818 = vmatprep.subr.mxu1 %v6483_v18 }
 0x32a   : > { %v2050_v34 = vpop.permute.xlu1 %2049  ;;  %5806 = vmatmul.mubr.msk.f32.vlgmr.msra.gmra.mrb[2].mxu0 %vm1518_vm5, %v1497_v21  ;;  %5811 = vmatmul.mubr.msk.f32.vlgmr.msra.gmra.mrb[8].mxu1 %vm1518_vm5, %v1505_v25  ;;  %v1974_v35 = vpop.permute.xlu0 %1973 }
 0x32b   : > { %5814 = vmatpush3.xpose.msk.msra.mxu0 %vm1518_vm5, %v1974_v35  ;;  %5819 = vmatpush3.xpose.msk.msra.mxu1 %vm1518_vm5, %v2050_v34 }
 0x32c   : > { %5815 = vmatprep.mubr.msk.f32.mxu0 %vm6486_vm4, %v6483_v18  ;;  %5820 = vmatprep.mubr.msk.f32.mxu1 %vm6486_vm4, %v6483_v18 }
 0x32d   : > { %5823 = vmatprep.subr.mxu0 %v6483_v18  ;;  %5828 = vmatprep.subr.mxu1 %v6483_v18 }
 0x32e   : > { %v2206_v36 = vpop.permute.xlu1 %2205  ;;  %5816 = vmatmul.mubr.msk.f32.vlgmr.msra.gmra.mrb[4].mxu0 %vm1518_vm5, %v6771_v26  ;;  %5821 = vmatmul.mubr.msk.f32.vlgmr.msra.gmra.mrb[10].mxu1 %vm1518_vm5, %v6775_v27 }
 0x32f   : > { %v6825_v37 = vpop.permute.xlu0 %2509  ;;  %5824 = vmatpush3.msra.mxu0 %v2206_v36  ;;  %5825 = vmatprep.mubr.msk.f32.mxu0 %vm6486_vm4, %v6483_v18 }
 0x330   : > { %5833 = vmatprep.subr.mxu0 %v6483_v18  ;;  %5830 = vmatprep.mubr.msk.f32.mxu1 %vm6486_vm4, %v6483_v18 }
 0x332   : > { %v2586_v12 = vpop.permute.xlu1 %2585 }
 0x333   : > { %v2282_v38 = vpop.permute.xlu0 %2281 }
 0x334   : > { %5829 = vmatpush3.msra.mxu1 %v2282_v38 }
 0x335   : > { %5838 = vmatprep.subr.mxu1 %v6483_v18 }
 0x336   : > { %v2358_v16 = vpop.permute.xlu1 %2357 }
 0x33a   : > { %v2434_v17 = vpop.permute.xlu1 %2433 }
 0x38f   : > { %v1589_v40 = vpop.f32.mrb[2].mxu1 }
 0x390   : > { %v2125_v41 = vadd.f32 %v1589_v40, %v1514_v39  ;;  %v5787_v42 = vpop.f32.mrb[3].mxu1 }
 0x392   : > { %v2133_v43 = vsel %vm1518_vm5, %v2125_v41, -inf }
 0x393   : > { %2134 = vmax.xlane.f32.xlu0 %v2133_v43 }
 0x3f5   : > { %v1665_v44 = vpop.f32.mrb[4].mxu1 }
 0x3f6   : > { %v2126_v45 = vadd.f32 %v1665_v44, %v1514_v39  ;;  %v5792_v46 = vpop.f32.mrb[5].mxu1 }
 0x3f8   : > { %v2136_v47 = vsel %vm1518_vm5, %v2126_v45, -inf }
 0x3f9   : > { %2137 = vmax.xlane.f32.xlu1 %v2136_v47  ;;  %v1741_v48 = vpop.f32.mrb[0].mxu0  ;;  %v1817_v49 = vpop.f32.mrb[6].mxu1 }
 0x3fa   : > { %v2127_v50 = vadd.f32 %v1741_v48, %v1514_v39  ;;  %v5797_v51 = vpop.f32.mrb[1].mxu0  ;;  %v5802_v52 = vpop.f32.mrb[7].mxu1  ;;  %v2128_v54 = vadd.f32 %v1817_v49, %v1514_v39 }
 0x3fc   : > { %v2139_v55 = vsel %vm1518_vm5, %v2127_v50, -inf  ;;  %v2142_v62 = vsel %vm1518_vm5, %v2128_v54, -inf }
 0x3fd   : > { %v1969_v56 = vpop.f32.mrb[8].mxu1  ;;  %2140 = vmax.xlane.f32.xlu0 %v2139_v55  ;;  %v1893_v57 = vpop.f32.mrb[2].mxu0 }
 0x3fe   : > { %v2129_v58 = vadd.f32 %v1893_v57, %v1515_v53  ;;  %v5807_v59 = vpop.f32.mrb[3].mxu0  ;;  %v5812_v60 = vpop.f32.mrb[9].mxu1  ;;  %v2130_v61 = vadd.f32 %v1969_v56, %v1515_v53 }
 0x400   : > { %v2145_v63 = vsel %vm1518_vm5, %v2129_v58, -inf  ;;  %v2148_v6 = vsel %vm1518_vm5, %v2130_v61, -inf }
 0x401   : > { %v2121_v0 = vpop.f32.mrb[10].mxu1  ;;  %2143 = vmax.xlane.f32.xlu0 %v2142_v62  ;;  %2146 = vmax.xlane.f32.xlu1 %v2145_v63  ;;  %v2045_v1 = vpop.f32.mrb[4].mxu0  ;;  %v2861_v62 = vld [vmem:[%s7318_s28] sm:$0xff]  ;;  %v2862_v63 = vld [vmem:[%s7318_s28 + $0x8] sm:$0xff] }
 0x402   : > { %v2131_v2 = vadd.f32 %v2045_v1, %v1515_v53  ;;  %v5817_v3 = vpop.f32.mrb[5].mxu0  ;;  %v5822_v4 = vpop.f32.mrb[11].mxu1  ;;  %v2132_v5 = vadd.f32 %v2121_v0, %v1515_v53  ;;  %v6071_v0 = vpack.c.bf16 %v2862_v63, %v2861_v62  ;;  %v3092_v63 = vld [vmem:[%s6703_s29] sm:$0xff] }
 0x404   : > { %v2151_v7 = vsel %vm1518_vm5, %v2131_v2, -inf  ;;  %v2154_v8 = vsel %vm1518_vm5, %v2132_v5, -inf }
 0x405   : > { %2149 = vmax.xlane.f32.xlu0 %v2148_v6  ;;  %2152 = vmax.xlane.f32.xlu1 %v2151_v7  ;;  %v2863_v7 = vld [vmem:[%s7318_s28 + $0x10] sm:$0xff] }
 0x409   : > { %2155 = vmax.xlane.f32.xlu0 %v2154_v8  ;;  %v2864_v8 = vld [vmem:[%s7318_s28 + $0x18] sm:$0xff]  ;;  %s7321_s28 = sld [smem:[#allocation6_spill]] }
 0x416   : > { %2737 = vrot.lane.b32.xlu1 %v6775_v27, %s6489_s23 }
 0x41f   : > { %2661 = vrot.lane.b32.xlu0 %v6771_v26, %s6489_s23  ;;  %s7320_s23 = scalar_lea.vmem %s7319_s3, %s6684_s0  ;;  %s7322_s3 = sld [smem:[#allocation37_spill]] }
 0x420   : > { %v2135_v9 = vpop.xlane.xlu0 %2134 }
 0x421   : > { %v2157_v10 = vsub.f32 %v2125_v41, %v2135_v9 }
 0x423   : > { %v2165_v11 = vmul.f32 1.442695, %v2157_v10 }
 0x425   : > { %6322 = vpow2.f32 %v2165_v11 }
 0x42f   : > { %v6847_v14 = vpop.eup %6322 }
 0x430   : > { %5826 = vmatmul.mubr.msk.f32.vlgmr.msra.gmra.mrb[6].mxu0 %vm1518_vm5, %v6847_v14 }
 0x431   : > { %5834 = vmatpush3.msra.mxu0 %v2358_v16  ;;  %5835 = vmatprep.mubr.msk.f32.mxu0 %vm6486_vm4, %v6483_v18 }
 0x432   : > { %5843 = vmatprep.subr.mxu0 %v6483_v18 }
 0x486   : > { %v2138_v19 = vpop.xlane.xlu1 %2137 }
 0x487   : > { %v2158_v20 = vsub.f32 %v2126_v45, %v2138_v19 }
 0x489   : > { %v2167_v21 = vmul.f32 1.442695, %v2158_v20 }
 0x48a   : > { %v2141_v22 = vpop.xlane.xlu0 %2140 }
 0x48b   : > { %6324 = vpow2.f32 %v2167_v21  ;;  %v2159_v23 = vsub.f32 %v2127_v50, %v2141_v22 }
 0x48d   : > { %v2169_v24 = vmul.f32 1.442695, %v2159_v23 }
 0x48e   : > { %v2147_v25 = vpop.xlane.xlu1 %2146  ;;  %v2144_v26 = vpop.xlane.xlu0 %2143 }
 0x48f   : > { %6326 = vpow2.f32 %v2169_v24  ;;  %v2161_v27 = vsub.f32 %v2129_v58, %v2147_v25  ;;  %v2160_v28 = vsub.f32 %v2128_v54, %v2144_v26  ;;  %v2181_v54 = vsel %vm1518_vm5, %v6847_v14, 0.0 }
 0x491   : > { %v2173_v29 = vmul.f32 1.442695, %v2161_v27  ;;  %v2171_v30 = vmul.f32 1.442695, %v2160_v28 }
 0x492   : > { %v2153_v31 = vpop.xlane.xlu1 %2152  ;;  %v2150_v32 = vpop.xlane.xlu0 %2149 }
 0x493   : > { %6328 = vpow2.f32 %v2173_v29  ;;  %v2163_v33 = vsub.f32 %v2131_v2, %v2153_v31  ;;  %v2162_v34 = vsub.f32 %v2130_v61, %v2150_v32 }
 0x494   : > { %6330 = vpow2.f32 %v2171_v30 }
 0x495   : > { %v6325_v35 = vpop.eup %6324  ;;  %v2177_v36 = vmul.f32 1.442695, %v2163_v33  ;;  %v2175_v38 = vmul.f32 1.442695, %v2162_v34 }
 0x496   : > { %5831 = vmatmul.mubr.msk.f32.vlgmr.msra.gmra.mrb[12].mxu1 %vm1518_vm5, %v6325_v35  ;;  %v2156_v39 = vpop.xlane.xlu0 %2155  ;;  %v2184_v40 = vsel %vm1518_vm5, %v6325_v35, 0.0  ;;  %v2738_v51 = vpop.permute.xlu1 %2737 }
 0x497   : > { %6332 = vpow2.f32 %v2177_v36  ;;  %5839 = vmatpush3.msra.mxu1 %v2434_v17  ;;  %v2164_v41 = vsub.f32 %v2132_v5, %v2156_v39  ;;  %2185 = vadd.xlane.f32.xlu0 %v2184_v40 }
 0x498   : > { %6334 = vpow2.f32 %v2175_v38  ;;  %5840 = vmatprep.mubr.msk.f32.mxu1 %vm6486_vm4, %v6483_v18  ;;  %5848 = vmatprep.subr.mxu1 %v6483_v18 }
 0x499   : > { %v6327_v42 = vpop.eup %6326  ;;  %v2179_v43 = vmul.f32 1.442695, %v2164_v41 }
 0x49a   : > { %5836 = vmatmul.mubr.msk.f32.vlgmr.msra.gmra.mrb[8].mxu0 %vm1518_vm5, %v6327_v42  ;;  %v2187_v44 = vsel %vm1518_vm5, %v6327_v42, 0.0  ;;  %v2662_v47 = vpop.permute.xlu0 %2661 }
 0x49b   : > { %6336 = vpow2.f32 %v2179_v43  ;;  %5844 = vmatpush3.msra.mxu0 %v6825_v37  ;;  %2188 = vadd.xlane.f32.xlu1 %v2187_v44 }
 0x49c   : > { %5845 = vmatprep.mubr.msk.f32.mxu0 %vm6486_vm4, %v6483_v18  ;;  %5853 = vmatprep.subr.mxu0 %v6483_v18 }
 0x49d   : > { %v6329_v45 = vpop.eup %6328 }
 0x49e   : > { %v6331_v46 = vpop.eup %6330  ;;  %5846 = vmatmul.mubr.msk.f32.vlgmr.msra.gmra.mrb[10].mxu0 %vm1518_vm5, %v6329_v45  ;;  %v2193_v56 = vsel %vm1518_vm5, %v6329_v45, 0.0 }
 0x49f   : > { %5841 = vmatmul.mubr.msk.f32.vlgmr.msra.gmra.mrb[14].mxu1 %vm1518_vm5, %v6331_v46  ;;  %5854 = vmatpush3.msra.mxu0 %v2662_v47  ;;  %v2190_v48 = vsel %vm1518_vm5, %v6331_v46, 0.0 }
 0x4a0   : > { %5849 = vmatpush3.msra.mxu1 %v2586_v12  ;;  %2191 = vadd.xlane.f32.xlu0 %v2190_v48  ;;  %v6075_v12 = vpack.c.bf16 %v2864_v8, %v2863_v7 }
 0x4a1   : > { %v6333_v49 = vpop.eup %6332  ;;  %5850 = vmatprep.mubr.msk.f32.mxu1 %vm6486_vm4, %v6483_v18  ;;  %5855 = vmatprep.mubr.msk.f32.mxu0 %vm6486_vm4, %v6483_v18 }
 0x4a2   : > { %v6335_v37 = vpop.eup %6334  ;;  %5858 = vmatprep.subr.mxu1 %v6483_v18  ;;  %5856 = vmatmul.mubr.msk.f32.vlgmr.msra.gmra.mrb[12].mxu0 %vm1518_vm5, %v6333_v49  ;;  %v2199_v50 = vsel %vm1518_vm5, %v6333_v49, 0.0 }
 0x4a3   : > { %5851 = vmatmul.mubr.msk.f32.vlgmr.msra.gmra.mrb[16].mxu1 %vm1518_vm5, %v6335_v37  ;;  %2200 = vadd.xlane.f32.xlu1 %v2199_v50  ;;  %v2196_v52 = vsel %vm1518_vm5, %v6335_v37, 0.0 }
 0x4a4   : > { %5859 = vmatpush3.msra.mxu1 %v2738_v51  ;;  %2197 = vadd.xlane.f32.xlu0 %v2196_v52 }
 0x4a5   : > { %v6337_v53 = vpop.eup %6336  ;;  %5860 = vmatprep.mubr.msk.f32.mxu1 %vm6486_vm4, %v6483_v18  ;;  %6072 = vmatprep.subr.bf16.mxu0 %v6071_v0 }
 0x4a6   : > { %v2202_v55 = vsel %vm1518_vm5, %v6337_v53, 0.0  ;;  %6074 = vmatpush3.bf16.msra.mxu0 %v6071_v0  ;;  %v3093_v0 = vld [vmem:[%s6703_s29 + $0x8] sm:$0xff] }
 0x4a7   : > { %5861 = vmatmul.mubr.msk.f32.vlgmr.msra.gmra.mrb[18].mxu1 %vm1518_vm5, %v6337_v53  ;;  %2182 = vadd.xlane.f32.xlu1 %v2181_v54  ;;  %v5545_v54 = vld [vmem:[%s7320_s23] ss:$0 sm:$0xff] }
 0x4a8   : > { %2203 = vadd.xlane.f32.xlu0 %v2202_v55  ;;  %6076 = vmatprep.subr.bf16.mxu0 %v6075_v12 }
 0x4aa   : > { %6078 = vmatpush3.bf16.msra.mxu0 %v6075_v12 }
 0x4ac   : > { %2194 = vadd.xlane.f32.xlu0 %v2193_v56 }
 0x503   : > { %v6884_v57 = vpop.f32.mrb[6].mxu0 }
 0x504   : > { %v5827_v58 = vpop.f32.mrb[7].mxu0 }
 0x524   : > { %v2186_v59 = vpop.xlane.xlu0 %2185 }
 0x525   : > { %6338 = vrcp.f32 %v2186_v59 }
 0x528   : > { %v2189_v60 = vpop.xlane.xlu1 %2188 }
 0x529   : > { %6340 = vrcp.f32 %v2189_v60 }
 0x52d   : > { %v2192_v61 = vpop.xlane.xlu0 %2191 }
 0x52f   : > { %v6339_v3 = vpop.eup %6338 }
 0x530   : > { %v2201_v2 = vpop.xlane.xlu1 %2200 }
 0x531   : > { %v2198_v1 = vpop.xlane.xlu0 %2197  ;;  %6342 = vrcp.f32 %v2201_v2  ;;  %v6087_v2 = vpack.c.bf16 %v3093_v0, %v3092_v63 }
 0x532   : > { %6344 = vrcp.f32 %v2198_v1  ;;  %v3094_v1 = vld [vmem:[%s6703_s29 + $0x10] sm:$0xff] }
 0x533   : > { %v6341_v9 = vpop.eup %6340  ;;  %6346 = vrcp.f32 %v2192_v61  ;;  %6088 = vmatprep.subr.bf16.mxu0 %v6087_v2 }
 0x534   : > { %v2183_v36 = vpop.xlane.xlu1 %2182 }
 0x535   : > { %v2204_v10 = vpop.xlane.xlu0 %2203 }
 0x536   : > { %6348 = vrcp.f32 %v2204_v10 }
 0x537   : > { %6350 = vrcp.f32 %v2183_v36 }
 0x539   : > { %v2195_v38 = vpop.xlane.xlu0 %2194 }
 0x53a   : > { %6352 = vrcp.f32 %v2195_v38 }
 0x53b   : > { %v6343_v22 = vpop.eup %6342 }
 0x53c   : > { %v6345_v24 = vpop.eup %6344 }
 0x53d   : > { %v6347_v30 = vpop.eup %6346 }
 0x540   : > { %v6349_v31 = vpop.eup %6348 }
 0x541   : > { %v6351_v41 = vpop.eup %6350 }
 0x542   : > { %v2821_v46 = vmul.f32 %v6351_v41, %v6884_v57  ;;  %v5548_v41 = vld [vmem:[%s1282_s19] ss:$0 sm:$0xff]  ;;  %s7328_s19 = sld [smem:[#allocation17_spill]] }
 0x544   : > { %v6353_v42 = vpop.eup %6352 }
 0x569   : > { %v2353_v4 = vpop.f32.mrb[12].mxu1 }
 0x56a   : > { %v2822_v5 = vmul.f32 %v6339_v3, %v2353_v4  ;;  %v5832_v6 = vpop.f32.mrb[13].mxu1  ;;  %v3095_v3 = vld [vmem:[%s6703_s29 + $0x18] sm:$0xff]  ;;  %v1403_v4 = vld [vmem:[%s7321_s28] sm:$0xff]  ;;  %s7323_s29 = scalar_lea.vmem %s6575_s12, %s6684_s0 }
 0x56c   : > { %2831 = vrot.lane.b32.xlu1 %v2822_v5, %s6490_s2  ;;  %v6091_v5 = vpack.c.bf16 %v3095_v3, %v3094_v1 }
 0x56d   : > { %v2429_v11 = vpop.f32.mrb[8].mxu0 }
 0x56e   : > { %v2823_v14 = vmul.f32 %v6341_v9, %v2429_v11  ;;  %v5837_v16 = vpop.f32.mrb[9].mxu0 }
 0x570   : > { %2839 = vrot.lane.b32.xlu1 %v2823_v14, %s6491_s25 }
 0x571   : > { %v2581_v17 = vpop.f32.mrb[10].mxu0 }
 0x572   : > { %v2505_v19 = vpop.f32.mrb[14].mxu1  ;;  %v5847_v20 = vpop.f32.mrb[11].mxu0  ;;  %v2825_v43 = vmul.f32 %v6353_v42, %v2581_v17  ;;  %v3000_v17 = vld [vmem:[%s7322_s3] sm:$0xff] }
 0x573   : > { %v5842_v21 = vpop.f32.mrb[15].mxu1  ;;  %v2824_v33 = vmul.f32 %v6347_v30, %v2505_v19  ;;  %v3001_v19 = vld [vmem:[%s7322_s3 + $0x8] sm:$0xff] }
 0x574   : > { %v6079_v20 = vpack.c.bf16 %v3001_v19, %v3000_v17  ;;  %v1405_v21 = vld [vmem:[%s7321_s28 + $0x10] sm:$0xff] }
 0x575   : > { %v2733_v23 = vpop.f32.mrb[12].mxu0 }
 0x576   : > { %v2657_v25 = vpop.f32.mrb[16].mxu1  ;;  %v2827_v26 = vmul.f32 %v6343_v22, %v2733_v23  ;;  %v5857_v27 = vpop.f32.mrb[13].mxu0  ;;  %6080 = vmatprep.subr.bf16.mxu1 %v6079_v20  ;;  %v1406_v22 = vld [vmem:[%s7321_s28 + $0x18] sm:$0xff]  ;;  %v3002_v23 = vld [vmem:[%s7322_s3 + $0x10] sm:$0xff] }
 0x577   : > { %v2826_v28 = vmul.f32 %v6345_v24, %v2657_v25  ;;  %v5852_v29 = vpop.f32.mrb[17].mxu1  ;;  %6082 = vmatpush3.bf16.msra.mxu1 %v6079_v20  ;;  %v3003_v24 = vld [vmem:[%s7322_s3 + $0x18] sm:$0xff]  ;;  %v5553_v27 = vld [vmem:[%s7323_s29] ss:$0 sm:$0xff] }
 0x578   : > { %2841 = vrot.lane.b32.xlu1 %v2827_v26, %s6491_s25  ;;  %v6083_v25 = vpack.c.bf16 %v3003_v24, %v3002_v23  ;;  %v6493_v26 = vmov 0.0|0.0  }
 0x579   : > { %2833 = vrot.lane.b32.xlu0 %v2826_v28, %s6490_s2 }
 0x57a   : > { %v2809_v32 = vpop.f32.mrb[18].mxu1  ;;  %6084 = vmatprep.subr.bf16.mxu1 %v6083_v25 }
 0x57b   : > { %v2828_v34 = vmul.f32 %v6349_v31, %v2809_v32  ;;  %v5862_v35 = vpop.f32.mrb[19].mxu1  ;;  %6086 = vmatpush3.bf16.msra.mxu1 %v6083_v25 }
 0x57c   : > { %6095 = vmatprep.subr.bf16.mxu1 %v6493_v26 }
 0x57d   : > { %2847 = vrot.lane.b32.xlu0 %v2824_v33, %s6492_s6  ;;  %2849 = vrot.lane.b32.xlu1 %v2828_v34, %s6492_s6 }
 0x5de   : > { %v2832_v39 = vpop.permute.xlu1 %2831 }
 0x5df   : > { %v2853_v48 = vsel %vm1518_vm5, %v2821_v46, %v2832_v39 }
 0x5e2   : > { %v2840_v40 = vpop.permute.xlu1 %2839 }
 0x5e3   : > { %v2856_v49 = vsel %vm2855_vm6, %v2853_v48, %v2840_v40 }
 0x5ea   : > { %v2842_v44 = vpop.permute.xlu1 %2841 }
 0x5eb   : > { %v2834_v45 = vpop.permute.xlu0 %2833 }
 0x5ec   : > { %v2854_v47 = vsel %vm1518_vm5, %v2825_v43, %v2834_v45  ;;  %v5549_v43 = vld [vmem:[%s1285_s10] ss:$0 sm:$0xff]  ;;  %s7329_s10 = scalar_lea.vmem %s7328_s19, %s6684_s0 }
 0x5ed   : > { %v2857_v50 = vsel %vm2855_vm6, %v2854_v47, %v2842_v44 }
 0x5ef   : > { %v2850_v37 = vpop.permute.xlu1 %2849  ;;  %v2848_v51 = vpop.permute.xlu0 %2847 }
 0x5f0   : > { %v2860_v52 = vsel %vm2858_vm7, %v2857_v50, %v2850_v37  ;;  %v2859_v53 = vsel %vm2858_vm7, %v2856_v49, %v2848_v51 }
 0x5f1   : > { %5871 = vmatprep.mubr.msk.f32.mxu0 %vm1418_vm3, %v2859_v53 }
 0x5f2   : > { %5872 = vmatmul.mubr.msk.f32.vlgmr.msra.gmra.mrb[14].mxu0 %vm1418_vm3, %v2860_v52 }
 0x5f3   : > { %5893 = vmatprep.mubr.msk.f32.mxu0 %vm1418_vm3, %v1403_v4  ;;  %6090 = vmatpush3.bf16.msra.mxu0 %v6087_v2 }
 0x5f4   : > { %6092 = vmatprep.subr.bf16.mxu0 %v6091_v5 }
 0x5f7   : > { %6094 = vmatpush3.bf16.msra.mxu0 %v6091_v5 }
 0x5f8   : > { %6099 = vmatprep.subr.bf16.mxu0 %v6493_v26 }
 0x6c5   : > { %v5873_v55 = vpop.f32.mrb[14].mxu0 }
 0x6c6   : > { %v2950_v56 = vadd.f32 %v5873_v55, %v5545_v54  ;;  %v2944_v57 = vpop.f32.mrb[15].mxu0 }
 0x6c7   : > { %v2945_v58 = vadd.f32 %v5545_v54, %v2944_v57 }
 0x6c8   : > { %v2954_v59 = vadd.f32 %v2950_v56, %v6748_v15 }
 0x6c9   : > { %v2953_v60 = vadd.f32 %v2945_v58, %v6744_v13  ;;  %v1404_v13 = vld [vmem:[%s7321_s28 + $0x8] sm:$0xff] }
 0x6ca   : > { %v2960_v61 = vsel %vm1418_vm3, %v2954_v59, 0.0  ;;  %5894 = vmatmul.mubr.msk.f32.vlgmr.msra.gmra.mrb[16].mxu0 %vm1418_vm3, %v1404_v13  ;;  %v5550_v13 = vld [vmem:[%s7329_s10] ss:$0 sm:$0xff] }
 0x6cb   : > { %2961 = vadd.xlane.f32.xlu1 %v2960_v61  ;;  %v2957_v62 = vsel %vm1418_vm3, %v2953_v60, 0.0  ;;  %5896 = vmatprep.mubr.msk.f32.mxu0 %vm1418_vm3, %v1405_v21 }
 0x6cc   : > { %2958 = vadd.xlane.f32.xlu0 %v2957_v62 }
 0x6ce   : > { %5897 = vmatmul.mubr.msk.f32.gmra.mrb[18].mxu0 %vm1418_vm3, %v1406_v22 }
 0x6cf   : > { %5910 = vmatprep.mubr.msk.f32.mxu0 %vm6486_vm4, %v6483_v18 }
 0x758   : > { %v2962_v15 = vpop.xlane.xlu1 %2961 }
 0x759   : > { %v2965_v6 = vmul.f32 0.03125, %v2962_v15  ;;  %v2959_v7 = vpop.xlane.xlu0 %2958 }
 0x75a   : > { %v2964_v8 = vmul.f32 0.03125, %v2959_v7 }
 0x75b   : > { %v2967_v9 = vsub.f32 %v2954_v59, %v2965_v6 }
 0x75c   : > { %v2966_v10 = vsub.f32 %v2953_v60, %v2964_v8 }
 0x75d   : > { %v2969_v14 = vmul.f32 %v2967_v9, %v2967_v9 }
 0x75e   : > { %v2968_v11 = vmul.f32 %v2966_v10, %v2966_v10 }
 0x75f   : > { %v2973_v16 = vsel %vm1418_vm3, %v2969_v14, 0.0 }
 0x760   : > { %v2970_v12 = vsel %vm1418_vm3, %v2968_v11, 0.0 }
 0x761   : > { %2971 = vadd.xlane.f32.xlu0 %v2970_v12 }
 0x765   : > { %2974 = vadd.xlane.f32.xlu0 %v2973_v16 }
 0x79d   : > { %v5895_v28 = vpop.f32.mrb[16].mxu0 }
 0x79e   : > { %v6937_v29 = vadd.f32 %v5895_v28, %v5553_v27  ;;  %v3181_v30 = vpop.f32.mrb[17].mxu0 }
 0x79f   : > { %v6939_v31 = vadd.f32 %v5553_v27, %v3181_v30 }
 0x7a1   : > { %v6943_v32 = vpack.i.bf16 %v6937_v29, %v6939_v31  ;;  %v6096_v49 = vpack.c.bf16 %v6937_v29, %v6939_v31  ;;  %v5898_v51 = vpop.f32.mrb[18].mxu0 }
 0x7a2   : > { %v6978_v52 = vadd.f32 %v5898_v51, %v5553_v27  ;;  %v3191_v53 = vpop.f32.mrb[19].mxu0 }
 0x7a3   : > { %6253 = vrot.lane.b32.xlu1 %v6943_v32, %s6485_s15  ;;  %6258 = vrot.lane.b32.xlu0 %v6943_v32, %s6487_s16  ;;  %v6980_v54 = vadd.f32 %v5553_v27, %v3191_v53 }
 0x7a5   : > { %v6267_v55 = vpack.i.bf16 %v6978_v52, %v6980_v54  ;;  %v6112_v56 = vpack.c.bf16 %v6978_v52, %v6980_v54 }
 0x7a7   : > { %6263 = vrot.lane.b32.xlu1 %v6943_v32, %s6484_s11  ;;  %6268 = vrot.lane.b32.xlu0 %v6267_v55, %s6485_s15 }
 0x7ee   : > { %v2972_v33 = vpop.xlane.xlu0 %2971 }
 0x7ef   : > { %v2976_v34 = vmul.f32 0.03125, %v2972_v33 }
 0x7f1   : > { %v2978_v35 = vadd.f32 1e-05, %v2976_v34 }
 0x7f2   : > { %v2975_v36 = vpop.xlane.xlu0 %2974 }
 0x7f3   : > { %6354 = vrsqrt.f32 %v2978_v35  ;;  %v2977_v38 = vmul.f32 0.03125, %v2975_v36 }
 0x7f5   : > { %v2979_v39 = vadd.f32 1e-05, %v2977_v38 }
 0x7f7   : > { %6356 = vrsqrt.f32 %v2979_v39 }
 0x7fd   : > { %v6355_v40 = vpop.eup %6354 }
 0x7fe   : > { %v2982_v42 = vmul.f32 %v6355_v40, %v2966_v10 }
 0x800   : > { %v2990_v44 = vmul.f32 %v5548_v41, %v2982_v42 }
 0x801   : > { %v6357_v45 = vpop.eup %6356 }
 0x802   : > { %v2983_v46 = vmul.f32 %v6357_v45, %v2967_v9  ;;  %v6957_v47 = vadd.f32 %v5549_v43, %v2990_v44 }
 0x804   : > { %v2991_v48 = vmul.f32 %v5548_v41, %v2983_v46  ;;  %5882 = vmatprep.mubr.msk.f32.mxu1 %vm1418_vm3, %v6957_v47 }
 0x806   : > { %v6963_v37 = vadd.f32 %v5549_v43, %v2991_v48 }
 0x808   : > { %5883 = vmatmul.mubr.msk.f32.vlgmr.msra.gmra.mrb[20].mxu1 %vm1418_vm3, %v6963_v37 }
 0x809   : > { %6098 = vmatpush3.bf16.xpose.msk.msra.mxu1 %vm6967_vm8, %v6096_v49  ;;  %5903 = vmatprep.mubr.msk.f32.mxu1 %vm6486_vm4, %v6483_v18 }
 0x80a   : > { %6103 = vmatprep.subr.bf16.mxu1 %v6493_v26 }
 0x815   : > { %v6254_v57 = vpop.permute.xlu1 %6253  ;;  %v6259_v1 = vpop.permute.xlu0 %6258 }
 0x816   : > { %v6256_v58 = vunpack.i.h.bf16 %v6254_v57  ;;  %v6255_v59 = vunpack.i.l.bf16 %v6254_v57  ;;  %v6261_v6 = vunpack.i.h.bf16 %v6259_v1  ;;  %v6260_v7 = vunpack.i.l.bf16 %v6259_v1 }
 0x818   : > { %v6100_v60 = vpack.c.bf16 %v6256_v58, %v6255_v59  ;;  %v6104_v10 = vpack.c.bf16 %v6261_v6, %v6260_v7 }
 0x819   : > { %v6264_v61 = vpop.permute.xlu1 %6263  ;;  %v6269_v2 = vpop.permute.xlu0 %6268 }
 0x81a   : > { %6102 = vmatpush3.bf16.xpose.msk.msra.mxu0 %vm6967_vm8, %v6100_v60  ;;  %v6266_v62 = vunpack.i.h.bf16 %v6264_v61  ;;  %v6265_v63 = vunpack.i.l.bf16 %v6264_v61  ;;  %v6271_v3 = vunpack.i.h.bf16 %v6269_v2  ;;  %v6270_v4 = vunpack.i.l.bf16 %v6269_v2 }
 0x81b   : > { %6107 = vmatprep.subr.bf16.mxu0 %v6493_v26 }
 0x81c   : > { %v6108_v0 = vpack.c.bf16 %v6266_v62, %v6265_v63  ;;  %v6116_v5 = vpack.c.bf16 %v6271_v3, %v6270_v4 }
 0x8db   : > { %v5884_v15 = vpop.f32.mrb[20].mxu1 }
 0x8dc   : > { %v3083_v8 = vpop.f32.mrb[21].mxu1  ;;  %v3089_v11 = vadd.f32 %v5884_v15, %v5550_v13 }
 0x8dd   : > { %v3084_v9 = vadd.f32 %v5550_v13, %v3083_v8 }
 0x8df   : > { %3210 = vrot.lane.b32.xlu0 %v3084_v9, %s6484_s11  ;;  %3202 = vrot.lane.b32.xlu1 %v3084_v9, %s6485_s15 }
 0x8e0   : > { %5904 = vmatmul.mubr.msk.f32.vlgmr.msra.gmra.mrb[22].mxu1 %vm1518_vm5, %v3084_v9 }
 0x8e1   : > { %6106 = vmatpush3.bf16.xpose.msk.msra.mxu1 %vm6967_vm8, %v6104_v10  ;;  %5917 = vmatprep.mubr.msk.f32.mxu1 %vm6486_vm4, %v6483_v18 }
 0x8e2   : > { %6111 = vmatprep.subr.bf16.mxu1 %v6493_v26 }
 0x8e3   : > { %6278 = vrot.lane.b32.xlu0 %v6267_v55, %s6484_s11  ;;  %3206 = vrot.lane.b32.xlu1 %v3084_v9, %s6487_s16 }
 0x8e7   : > { %3208 = vrot.lane.b32.xlu0 %v3089_v11, %s6487_s16  ;;  %6273 = vrot.lane.b32.xlu1 %v6267_v55, %s6487_s16 }
 0x8eb   : > { %6288 = vrot.lane.b32.xlu0 %v6254_v57, %s6488_s18  ;;  %3204 = vrot.lane.b32.xlu1 %v3089_v11, %s6485_s15 }
 0x8ef   : > { %6303 = vrot.lane.b32.xlu0 %v6267_v55, %s6488_s18  ;;  %3212 = vrot.lane.b32.xlu1 %v3089_v11, %s6484_s11  ;;  %s7330_s11 = sld [smem:[#allocation8_spill]] }
 0x8f3   : > { %6283 = vrot.lane.b32.xlu1 %v6943_v32, %s6488_s18 }
 0x8f5   : > { %v5582_v41 = vld [vmem:[%s7330_s11] ss:$0 sm:$0xff]  ;;  %v5583_v46 = vld [vmem:[%s7330_s11 + $0x1] ss:$0 sm:$0xff]  ;;  %v5584_v51 = vld [vmem:[%s7330_s11 + $0x2] ss:$0 sm:$0xff] }
 0x8f6   : > { %v5585_v58 = vld [vmem:[%s7330_s11 + $0x3] ss:$0 sm:$0xff]  ;;  %v5586_v63 = vld [vmem:[%s7330_s11 + $0x4] ss:$0 sm:$0xff]  ;;  %v5587_v4 = vld [vmem:[%s7330_s11 + $0x5] ss:$0 sm:$0xff] }
 0x8f7   : > { %6293 = vrot.lane.b32.xlu1 %v6259_v1, %s6488_s18  ;;  %v5588_v7 = vld [vmem:[%s7330_s11 + $0x6] ss:$0 sm:$0xff] }
 0x8fb   : > { %6298 = vrot.lane.b32.xlu1 %v6264_v61, %s6488_s18 }
 0x8ff   : > { %6308 = vrot.lane.b32.xlu1 %v6269_v2, %s6488_s18 }
 0x951   : > { %v3203_v12 = vpop.permute.xlu1 %3202  ;;  %v3211_v14 = vpop.permute.xlu0 %3210 }
 0x952   : > { %5911 = vmatmul.mubr.msk.f32.vlgmr.msra.gmra.mrb[20].mxu0 %vm1518_vm5, %v3203_v12 }
 0x953   : > { %6110 = vmatpush3.bf16.xpose.msk.msra.mxu0 %vm6967_vm8, %v6108_v0  ;;  %5924 = vmatprep.mubr.msk.f32.mxu0 %vm6486_vm4, %v6483_v18 }
 0x954   : > { %6115 = vmatprep.subr.bf16.mxu0 %v6493_v26 }
 0x955   : > { %v3207_v16 = vpop.permute.xlu1 %3206  ;;  %v7020_v17 = vpop.permute.xlu0 %6278 }
 0x956   : > { %v6281_v19 = vunpack.i.h.bf16 %v7020_v17  ;;  %v6280_v20 = vunpack.i.l.bf16 %v7020_v17  ;;  %5918 = vmatmul.mubr.msk.f32.vlgmr.msra.gmra.mrb[24].mxu1 %vm1518_vm5, %v3207_v16 }
 0x957   : > { %6114 = vmatpush3.bf16.xpose.msk.msra.mxu1 %vm6967_vm8, %v6112_v56  ;;  %5931 = vmatprep.mubr.msk.f32.mxu1 %vm6486_vm4, %v6483_v18 }
 0x958   : > { %6119 = vmatprep.subr.bf16.mxu1 %v6493_v26  ;;  %v6124_v27 = vpack.c.bf16 %v6281_v19, %v6280_v20 }
 0x959   : > { %v7030_v21 = vpop.permute.xlu1 %6273  ;;  %v3209_v30 = vpop.permute.xlu0 %3208 }
 0x95a   : > { %v6276_v22 = vunpack.i.h.bf16 %v7030_v21  ;;  %v6275_v23 = vunpack.i.l.bf16 %v7030_v21  ;;  %5925 = vmatmul.mubr.msk.f32.vlgmr.msra.gmra.mrb[22].mxu0 %vm1518_vm5, %v3211_v14  ;;  %v5589_v14 = vld [vmem:[%s7330_s11 + $0x7] ss:$0 sm:$0xff] }
 0x95b   : > { %6118 = vmatpush3.bf16.xpose.msk.msra.mxu0 %vm6967_vm8, %v6116_v5  ;;  %5938 = vmatprep.mubr.msk.f32.mxu0 %vm6486_vm4, %v6483_v18 }
 0x95c   : > { %v6120_v24 = vpack.c.bf16 %v6276_v22, %v6275_v23  ;;  %6123 = vmatprep.subr.bf16.mxu0 %v6493_v26 }
 0x95d   : > { %v3205_v25 = vpop.permute.xlu1 %3204  ;;  %v6289_v10 = vpop.permute.xlu0 %6288 }
 0x95e   : > { %5932 = vmatmul.mubr.msk.f32.vlgmr.msra.gmra.mrb[26].mxu1 %vm1518_vm5, %v3089_v11 }
 0x95f   : > { %6122 = vmatpush3.bf16.xpose.msk.msra.mxu1 %vm6967_vm8, %v6120_v24  ;;  %5945 = vmatprep.mubr.msk.f32.mxu1 %vm6486_vm4, %v6483_v18 }
 0x960   : > { %6127 = vmatprep.subr.bf16.mxu1 %v6493_v26 }
 0x961   : > { %v3213_v28 = vpop.permute.xlu1 %3212  ;;  %v6304_v23 = vpop.permute.xlu0 %6303 }
 0x962   : > { %5939 = vmatmul.mubr.msk.f32.vlgmr.msra.gmra.mrb[24].mxu0 %vm1518_vm5, %v3205_v25 }
 0x963   : > { %6126 = vmatpush3.bf16.xpose.msk.msra.mxu0 %vm6967_vm8, %v6124_v27  ;;  %5952 = vmatprep.mubr.msk.f32.mxu0 %vm6486_vm4, %v6483_v18 }
 0x964   : > { %6133 = vmatprep.subr.bf16.mxu0 %v6493_v26 }
 0x965   : > { %v6284_v32 = vpop.permute.xlu1 %6283 }
 0x966   : > { %v6286_v33 = vunpack.i.h.bf16 %v6284_v32  ;;  %v6285_v34 = vunpack.i.l.bf16 %v6284_v32  ;;  %5946 = vmatmul.mubr.msk.f32.vlgmr.msra.gmra.mrb[28].mxu1 %vm1518_vm5, %v3209_v30  ;;  %v6291_v30 = vunpack.i.h.bf16 %v6289_v10  ;;  %v6290_v32 = vunpack.i.l.bf16 %v6289_v10 }
 0x967   : > { %5959 = vmatprep.mubr.msk.f32.mxu1 %vm6486_vm4, %v6483_v18 }
 0x968   : > { %v6128_v35 = vpack.c.bf16 %v6286_v33, %v6285_v34  ;;  %v6131_v34 = vpack.c.bf16 %v6291_v30, %v6290_v32 }
 0x969   : > { %v6294_v36 = vpop.permute.xlu1 %6293 }
 0x96a   : > { %5953 = vmatmul.mubr.msk.f32.vlgmr.msra.gmra.mrb[26].mxu0 %vm1518_vm5, %v3213_v28  ;;  %6129 = vmatpush3.bf16.msra.mxu1 %v6128_v35  ;;  %v6296_v38 = vunpack.i.h.bf16 %v6294_v36  ;;  %v6295_v39 = vunpack.i.l.bf16 %v6294_v36 }
 0x96b   : > { %6130 = vmatprep.subr.bf16.mxu1 %v6493_v26  ;;  %5973 = vmatprep.mubr.msk.f32.mxu0 %vm6486_vm4, %v6483_v18 }
 0x96c   : > { %v6134_v40 = vpack.c.bf16 %v6296_v38, %v6295_v39 }
 0x96d   : > { %v6299_v35 = vpop.permute.xlu1 %6298 }
 0x96e   : > { %6135 = vmatpush3.bf16.msra.mxu0 %v6134_v40 }
 0x96f   : > { %6139 = vmatprep.subr.bf16.mxu0 %v6493_v26 }
 0x971   : > { %v6309_v36 = vpop.permute.xlu1 %6308 }
 0x9b3   : > { %v3322_v42 = vpop.f32.mrb[22].mxu1 }
 0x9b4   : > { %v3906_v43 = vadd.f32 %v5582_v41, %v3322_v42  ;;  %v5905_v44 = vpop.f32.mrb[23].mxu1 }
 0x9b6   : > { %v3914_v45 = vsel %vm2855_vm6, %v3906_v43, -inf }
 0x9b7   : > { %3915 = vmax.xlane.f32.xlu0 %v3914_v45  ;;  %v6301_v45 = vunpack.i.h.bf16 %v6299_v35 }
 0xa25   : > { %v3398_v48 = vpop.f32.mrb[20].mxu0 }
 0xa26   : > { %v3907_v49 = vadd.f32 %v5583_v46, %v3398_v48  ;;  %v5912_v50 = vpop.f32.mrb[21].mxu0  ;;  %v6300_v46 = vunpack.i.l.bf16 %v6299_v35 }
 0xa28   : > { %v3917_v53 = vsel %vm2855_vm6, %v3907_v49, -inf }
 0xa29   : > { %v3474_v55 = vpop.f32.mrb[24].mxu1  ;;  %3918 = vmax.xlane.f32.xlu1 %v3917_v53 }
 0xa2a   : > { %v3908_v56 = vadd.f32 %v5584_v51, %v3474_v55  ;;  %v5919_v57 = vpop.f32.mrb[25].mxu1  ;;  %v6305_v55 = vunpack.i.l.bf16 %v6304_v23 }
 0xa2b   : > { %v6137_v57 = vpack.c.bf16 %v6301_v45, %v6300_v46  ;;  %v4664_v46 = vld [vmem:[%s6708_s13] sm:$0xff] }
 0xa2c   : > { %v3920_v59 = vsel %vm2855_vm6, %v3908_v56, -inf }
 0xa2d   : > { %v3550_v60 = vpop.f32.mrb[22].mxu0  ;;  %3921 = vmax.xlane.f32.xlu0 %v3920_v59 }
 0xa2e   : > { %v3909_v61 = vadd.f32 %v5585_v58, %v3550_v60  ;;  %v5926_v62 = vpop.f32.mrb[23].mxu0 }
 0xa2f   : > { %v6311_v62 = vunpack.i.h.bf16 %v6309_v36 }
 0xa30   : > { %v3923_v0 = vsel %vm2855_vm6, %v3909_v61, -inf }
 0xa31   : > { %v3626_v1 = vpop.f32.mrb[26].mxu1  ;;  %3924 = vmax.xlane.f32.xlu0 %v3923_v0 }
 0xa32   : > { %v3910_v2 = vadd.f32 %v5586_v63, %v3626_v1  ;;  %v5933_v3 = vpop.f32.mrb[27].mxu1  ;;  %v6310_v63 = vunpack.i.l.bf16 %v6309_v36 }
 0xa34   : > { %v3926_v5 = vsel %vm2855_vm6, %v3910_v2, -inf }
 0xa35   : > { %v3702_v13 = vpop.f32.mrb[24].mxu0  ;;  %3927 = vmax.xlane.f32.xlu1 %v3926_v5  ;;  %v6143_v5 = vpack.c.bf16 %v6311_v62, %v6310_v63 }
 0xa36   : > { %v7071_v15 = vadd.f32 %v5587_v4, %v3702_v13  ;;  %v5940_v6 = vpop.f32.mrb[25].mxu0 }
 0xa38   : > { %v3929_v8 = vsel %vm2855_vm6, %v7071_v15, -inf }
 0xa39   : > { %3930 = vmax.xlane.f32.xlu0 %v3929_v8  ;;  %v3778_v9 = vpop.f32.mrb[28].mxu1 }
 0xa3a   : > { %v7076_v11 = vadd.f32 %v5588_v7, %v3778_v9  ;;  %v5947_v12 = vpop.f32.mrb[29].mxu1 }
 0xa3c   : > { %v3932_v16 = vsel %vm2855_vm6, %v7076_v11, -inf }
 0xa3d   : > { %v3854_v19 = vpop.f32.mrb[26].mxu0  ;;  %3933 = vmax.xlane.f32.xlu1 %v3932_v16 }
 0xa3e   : > { %v7081_v20 = vadd.f32 %v5589_v14, %v3854_v19  ;;  %v5954_v22 = vpop.f32.mrb[27].mxu0 }
 0xa40   : > { %v3935_v24 = vsel %vm2855_vm6, %v7081_v20, -inf }
 0xa41   : > { %3936 = vmax.xlane.f32.xlu0 %v3935_v24 }
 0xa44   : > { %v3916_v25 = vpop.xlane.xlu0 %3915 }
 0xa45   : > { %v3938_v27 = vsub.f32 %v3906_v43, %v3916_v25 }
 0xa47   : > { %v3946_v28 = vmul.f32 1.442695, %v3938_v27 }
 0xa49   : > { %6358 = vpow2.f32 %v3946_v28 }
 0xa4e   : > { %6318 = vrot.lane.b32.xlu1 %v7020_v17, %s6488_s18 }
 0xa53   : > { %v7087_v33 = vpop.eup %6358 }
 0xa54   : > { %5960 = vmatmul.mubr.msk.f32.vlgmr.msra.gmra.mrb[30].mxu1 %vm2855_vm6, %v7087_v33  ;;  %v3962_v30 = vsel %vm2855_vm6, %v7087_v33, 0.0 }
 0xa55   : > { %6132 = vmatpush3.bf16.msra.mxu1 %v6131_v34  ;;  %5966 = vmatprep.mubr.msk.f32.mxu1 %vm6486_vm4, %v6483_v18 }
 0xa56   : > { %6136 = vmatprep.subr.bf16.mxu1 %v6493_v26 }
 0xa57   : > { %6313 = vrot.lane.b32.xlu0 %v7030_v21, %s6488_s18  ;;  %v6306_v21 = vunpack.i.h.bf16 %v6304_v23 }
 0xab6   : > { %v3919_v17 = vpop.xlane.xlu1 %3918 }
 0xab7   : > { %v3939_v38 = vsub.f32 %v3907_v49, %v3919_v17 }
 0xab9   : > { %v3948_v39 = vmul.f32 1.442695, %v3939_v38 }
 0xaba   : > { %v3922_v40 = vpop.xlane.xlu0 %3921 }
 0xabb   : > { %6360 = vpow2.f32 %v3948_v39  ;;  %v3940_v41 = vsub.f32 %v3908_v56, %v3922_v40 }
 0xabd   : > { %v3950_v42 = vmul.f32 1.442695, %v3940_v41 }
 0xabe   : > { %v3925_v43 = vpop.xlane.xlu0 %3924 }
 0xabf   : > { %6362 = vpow2.f32 %v3950_v42  ;;  %v3941_v44 = vsub.f32 %v3909_v61, %v3925_v43  ;;  %v6140_v61 = vpack.c.bf16 %v6306_v21, %v6305_v55  ;;  %v4666_v55 = vld [vmem:[%s6708_s13 + $0x10] sm:$0xff] }
 0xac1   : > { %v3952_v48 = vmul.f32 1.442695, %v3941_v44 }
 0xac2   : > { %v3928_v50 = vpop.xlane.xlu1 %3927 }
 0xac3   : > { %6364 = vpow2.f32 %v3952_v48  ;;  %v3942_v51 = vsub.f32 %v3910_v2, %v3928_v50  ;;  %v4665_v48 = vld [vmem:[%s6708_s13 + $0x8] sm:$0xff] }
 0xac4   : > { %v6151_v50 = vpack.c.bf16 %v4665_v48, %v4664_v46 }
 0xac5   : > { %v6361_v53 = vpop.eup %6360  ;;  %v3954_v58 = vmul.f32 1.442695, %v3942_v51 }
 0xac6   : > { %v3931_v49 = vpop.xlane.xlu0 %3930  ;;  %5967 = vmatmul.mubr.msk.f32.vlgmr.msra.gmra.mrb[32].mxu1 %vm2855_vm6, %v6361_v53  ;;  %v3965_v56 = vsel %vm2855_vm6, %v6361_v53, 0.0 }
 0xac7   : > { %6366 = vpow2.f32 %v3954_v58  ;;  %v3943_v59 = vsub.f32 %v7071_v15, %v3931_v49  ;;  %6138 = vmatpush3.bf16.msra.mxu1 %v6137_v57  ;;  %3966 = vadd.xlane.f32.xlu0 %v3965_v56  ;;  %v4667_v57 = vld [vmem:[%s6708_s13 + $0x18] sm:$0xff]  ;;  %s7331_s13 = scalar_lea.vmem %s6585_s27, %s6684_s0 }
 0xac8   : > { %5980 = vmatprep.mubr.msk.f32.mxu1 %vm6486_vm4, %v6483_v18  ;;  %6142 = vmatprep.subr.bf16.mxu1 %v6493_v26  ;;  %v6155_v58 = vpack.c.bf16 %v4667_v57, %v4666_v55  ;;  %v4804_v55 = vld [vmem:[%s6713_s8 + $0x10] sm:$0xff]  ;;  %v4805_v57 = vld [vmem:[%s6713_s8 + $0x18] sm:$0xff] }
 0xac9   : > { %v6363_v60 = vpop.eup %6362  ;;  %v3956_v0 = vmul.f32 1.442695, %v3943_v59 }
 0xaca   : > { %v3934_v1 = vpop.xlane.xlu1 %3933  ;;  %5974 = vmatmul.mubr.msk.f32.vlgmr.msra.gmra.mrb[28].mxu0 %vm2855_vm6, %v6363_v60  ;;  %v3968_v2 = vsel %vm2855_vm6, %v6363_v60, 0.0 }
 0xacb   : > { %6368 = vpow2.f32 %v3956_v0  ;;  %v3944_v3 = vsub.f32 %v7076_v11, %v3934_v1  ;;  %6141 = vmatpush3.bf16.msra.mxu0 %v6140_v61  ;;  %3969 = vadd.xlane.f32.xlu1 %v3968_v2 }
 0xacc   : > { %5987 = vmatprep.mubr.msk.f32.mxu0 %vm6486_vm4, %v6483_v18  ;;  %6145 = vmatprep.subr.bf16.mxu0 %v6493_v26 }
 0xacd   : > { %v6365_v4 = vpop.eup %6364  ;;  %v3958_v13 = vmul.f32 1.442695, %v3944_v3 }
 0xace   : > { %v3937_v15 = vpop.xlane.xlu0 %3936  ;;  %v6319_v6 = vpop.permute.xlu1 %6318  ;;  %5981 = vmatmul.mubr.msk.f32.vlgmr.msra.gmra.mrb[34].mxu1 %vm2855_vm6, %v6365_v4  ;;  %v3971_v7 = vsel %vm2855_vm6, %v6365_v4, 0.0 }
 0xacf   : > { %6370 = vpow2.f32 %v3958_v13  ;;  %v3945_v8 = vsub.f32 %v7081_v20, %v3937_v15  ;;  %6144 = vmatpush3.bf16.msra.mxu1 %v6143_v5  ;;  %3972 = vadd.xlane.f32.xlu0 %v3971_v7  ;;  %v6321_v11 = vunpack.i.h.bf16 %v6319_v6  ;;  %v6320_v12 = vunpack.i.l.bf16 %v6319_v6 }
 0xad0   : > { %5994 = vmatprep.mubr.msk.f32.mxu1 %vm6486_vm4, %v6483_v18  ;;  %6148 = vmatprep.subr.bf16.mxu1 %v6493_v26 }
 0xad1   : > { %v6367_v9 = vpop.eup %6366  ;;  %v3960_v10 = vmul.f32 1.442695, %v3945_v8  ;;  %v6149_v22 = vpack.c.bf16 %v6321_v11, %v6320_v12 }
 0xad2   : > { %v6314_v14 = vpop.permute.xlu0 %6313  ;;  %5988 = vmatmul.mubr.msk.f32.vlgmr.msra.gmra.mrb[30].mxu0 %vm2855_vm6, %v6367_v9  ;;  %v3974_v32 = vsel %vm2855_vm6, %v6367_v9, 0.0 }
 0xad3   : > { %6372 = vpow2.f32 %v3960_v10  ;;  %v6316_v16 = vunpack.i.h.bf16 %v6314_v14  ;;  %v6315_v19 = vunpack.i.l.bf16 %v6314_v14  ;;  %6001 = vmatprep.mubr.msk.f32.mxu0 %vm6486_vm4, %v6483_v18 }
 0xad5   : > { %v6369_v20 = vpop.eup %6368  ;;  %v6146_v23 = vpack.c.bf16 %v6316_v16, %v6315_v19 }
 0xad6   : > { %5995 = vmatmul.mubr.msk.f32.vlgmr.msra.gmra.mrb[36].mxu1 %vm2855_vm6, %v6369_v20  ;;  %v3977_v26 = vsel %vm2855_vm6, %v6369_v20, 0.0 }
 0xad7   : > { %6150 = vmatpush3.bf16.msra.mxu1 %v6149_v22  ;;  %3978 = vadd.xlane.f32.xlu0 %v3977_v26 }
 0xad8   : > { %6147 = vmatpush3.bf16.msra.mxu0 %v6146_v23  ;;  %6008 = vmatprep.mubr.msk.f32.mxu1 %vm6486_vm4, %v6483_v18 }
 0xad9   : > { %v6371_v24 = vpop.eup %6370  ;;  %6152 = vmatprep.subr.bf16.mxu0 %v6151_v50 }
 0xada   : > { %v3980_v25 = vsel %vm2855_vm6, %v6371_v24, 0.0 }
 0xadb   : > { %6002 = vmatmul.mubr.msk.f32.vlgmr.msra.gmra.mrb[32].mxu0 %vm2855_vm6, %v6371_v24  ;;  %3981 = vadd.xlane.f32.xlu1 %v3980_v25 }
 0xadc   : > { %6154 = vmatpush3.bf16.msra.mxu0 %v6151_v50 }
 0xadd   : > { %v6373_v27 = vpop.eup %6372  ;;  %6156 = vmatprep.subr.bf16.mxu0 %v6155_v58 }
 0xade   : > { %6009 = vmatmul.mubr.msk.f32.vlgmr.msra.gmra.mrb[38].mxu1 %vm2855_vm6, %v6373_v27  ;;  %v3983_v28 = vsel %vm2855_vm6, %v6373_v27, 0.0 }
 0xadf   : > { %3984 = vadd.xlane.f32.xlu0 %v3983_v28  ;;  %3963 = vadd.xlane.f32.xlu1 %v3962_v30 }
 0xae0   : > { %6158 = vmatpush3.bf16.msra.mxu0 %v6155_v58  ;;  %v6163_v58 = vpack.c.bf16 %v4805_v57, %v4804_v55 }
 0xae3   : > { %3975 = vadd.xlane.f32.xlu0 %v3974_v32 }
 0xb27   : > { %v7128_v18 = vpop.f32.mrb[30].mxu1 }
 0xb28   : > { %v5961_v34 = vpop.f32.mrb[31].mxu1 }
 0xb54   : > { %v3967_v35 = vpop.xlane.xlu0 %3966 }
 0xb55   : > { %6374 = vrcp.f32 %v3967_v35 }
 0xb58   : > { %v3970_v36 = vpop.xlane.xlu1 %3969 }
 0xb59   : > { %6376 = vrcp.f32 %v3970_v36 }
 0xb5c   : > { %v3973_v17 = vpop.xlane.xlu0 %3972 }
 0xb5f   : > { %v6375_v38 = vpop.eup %6374 }
 0xb63   : > { %v6377_v42 = vpop.eup %6376 }
 0xb64   : > { %v3979_v33 = vpop.xlane.xlu0 %3978 }
 0xb65   : > { %6378 = vrcp.f32 %v3979_v33 }
 0xb66   : > { %6380 = vrcp.f32 %v3973_v17 }
 0xb68   : > { %v3982_v51 = vpop.xlane.xlu1 %3981 }
 0xb69   : > { %6382 = vrcp.f32 %v3982_v51  ;;  %v4802_v51 = vld [vmem:[%s6713_s8] sm:$0xff] }
 0xb6c   : > { %v3985_v49 = vpop.xlane.xlu0 %3984  ;;  %v3964_v8 = vpop.xlane.xlu1 %3963 }
 0xb6d   : > { %6384 = vrcp.f32 %v3985_v49  ;;  %v4896_v49 = vld [vmem:[%s6719_s22] sm:$0xff] }
 0xb6e   : > { %6386 = vrcp.f32 %v3964_v8 }
 0xb6f   : > { %v6379_v60 = vpop.eup %6378 }
 0xb70   : > { %v6381_v0 = vpop.eup %6380  ;;  %v3976_v9 = vpop.xlane.xlu0 %3975 }
 0xb71   : > { %6388 = vrcp.f32 %v3976_v9  ;;  %v5602_v9 = vld [vmem:[%s1291_s7] ss:$0 sm:$0xff] }
 0xb73   : > { %v6383_v1 = vpop.eup %6382 }
 0xb77   : > { %v6385_v13 = vpop.eup %6384 }
 0xb78   : > { %v6387_v11 = vpop.eup %6386 }
 0xb79   : > { %v4626_v14 = vmul.f32 %v6387_v11, %v7128_v18  ;;  %v5598_v18 = vld [vmem:[%s7331_s13] ss:$0 sm:$0xff] }
 0xb7b   : > { %v6389_v23 = vpop.eup %6388 }
 0xb99   : > { %v4140_v39 = vpop.f32.mrb[32].mxu1 }
 0xb9a   : > { %v4627_v40 = vmul.f32 %v6375_v38, %v4140_v39  ;;  %v5968_v41 = vpop.f32.mrb[33].mxu1 }
 0xb9c   : > { %4636 = vrot.lane.b32.xlu1 %v4627_v40, %s6490_s2 }
 0xb9d   : > { %v4219_v43 = vpop.f32.mrb[28].mxu0 }
 0xb9e   : > { %v4628_v44 = vmul.f32 %v6377_v42, %v4219_v43  ;;  %v5975_v45 = vpop.f32.mrb[29].mxu0 }
 0xba0   : > { %4644 = vrot.lane.b32.xlu1 %v4628_v44, %s6491_s25 }
 0xba1   : > { %v4298_v53 = vpop.f32.mrb[34].mxu1 }
 0xba2   : > { %v5982_v21 = vpop.f32.mrb[35].mxu1  ;;  %v4629_v2 = vmul.f32 %v6381_v0, %v4298_v53  ;;  %v4803_v53 = vld [vmem:[%s6713_s8 + $0x8] sm:$0xff] }
 0xba3   : > { %v6159_v21 = vpack.c.bf16 %v4803_v53, %v4802_v51  ;;  %v4901_v0 = vld [vmem:[%s6719_s22 + $0x28] sm:$0xff] }
 0xba5   : > { %v4377_v56 = vpop.f32.mrb[30].mxu0  ;;  %6160 = vmatprep.subr.bf16.mxu1 %v6159_v21 }
 0xba6   : > { %v5989_v59 = vpop.f32.mrb[31].mxu0  ;;  %v4630_v25 = vmul.f32 %v6389_v23, %v4377_v56  ;;  %6162 = vmatpush3.bf16.msra.mxu1 %v6159_v21  ;;  %v4897_v56 = vld [vmem:[%s6719_s22 + $0x8] sm:$0xff] }
 0xba7   : > { %6164 = vmatprep.subr.bf16.mxu1 %v6163_v58  ;;  %v4898_v59 = vld [vmem:[%s6719_s22 + $0x10] sm:$0xff] }
 0xba9   : > { %v4456_v61 = vpop.f32.mrb[36].mxu1 }
 0xbaa   : > { %v4631_v62 = vmul.f32 %v6379_v60, %v4456_v61  ;;  %v5996_v63 = vpop.f32.mrb[37].mxu1  ;;  %6166 = vmatpush3.bf16.msra.mxu1 %v6163_v58  ;;  %v6167_v60 = vpack.c.bf16 %v4897_v56, %v4896_v49  ;;  %v4899_v61 = vld [vmem:[%s6719_s22 + $0x18] sm:$0xff]  ;;  %v5609_v56 = vld [vmem:[%s1294_s5] ss:$0 sm:$0xff] }
 0xbab   : > { %v4900_v63 = vld [vmem:[%s6719_s22 + $0x20] sm:$0xff] }
 0xbac   : > { %4638 = vrot.lane.b32.xlu0 %v4631_v62, %s6490_s2  ;;  %v6171_v62 = vpack.c.bf16 %v4899_v61, %v4898_v59  ;;  %6168 = vmatprep.subr.bf16.mxu0 %v6167_v60  ;;  %v5610_v61 = vld [vmem:[%s1297_s30] ss:$0 sm:$0xff] }
 0xbae   : > { %v4535_v3 = vpop.f32.mrb[32].mxu0 }
 0xbaf   : > { %v4632_v4 = vmul.f32 %v6383_v1, %v4535_v3  ;;  %v6003_v5 = vpop.f32.mrb[33].mxu0  ;;  %v6175_v1 = vpack.c.bf16 %v4901_v0, %v4900_v63 }
 0xbb0   : > { %4652 = vrot.lane.b32.xlu0 %v4629_v2, %s6492_s6 }
 0xbb1   : > { %4646 = vrot.lane.b32.xlu1 %v4632_v4, %s6491_s25  ;;  %v4614_v15 = vpop.f32.mrb[38].mxu1 }
 0xbb2   : > { %v4633_v6 = vmul.f32 %v6385_v13, %v4614_v15  ;;  %v6010_v7 = vpop.f32.mrb[39].mxu1 }
 0xbb3   : > { %v5601_v7 = vld [vmem:[%s1288_s24] ss:$0 sm:$0xff]  ;;  %s7336_s24 = sld [smem:[#allocation34_spill]] }
 0xbb5   : > { %4654 = vrot.lane.b32.xlu1 %v4633_v6, %s6492_s6 }
 0xbb9   : > { %p5611_p5 = scmp.ne.s32.totalorder %s7336_s24, 1 }
 0xbba   : > { %s7337_s7 = sld [smem:[#allocation32_spill]] (!%p5611_p5)  ;;  %s7339_s5 = sld [smem:[#allocation28_spill]] (!%p5611_p5) }
 0xbbb   : > { %s7340_s30 = sld [smem:[#allocation9_spill]] (!%p5611_p5)  ;;  %s7341_s0 = sld [smem:[#allocation26_spill]] (!%p5611_p5) }
 0xbbc   : > { %s7343_s18 = sld [smem:[#allocation29_spill]] (!%p5611_p5)  ;;  %s7344_s25 = sld [smem:[#allocation30_spill]] (!%p5611_p5) }
 0xbc0   : > { %5045 = vst.msk [vmem:[%s7337_s7] sm:$0xff] (!%p5611_p5), %vm4911_vm9, %v6939_v31 }
 0xc0e   : > { %v4637_v10 = vpop.permute.xlu1 %4636 }
 0xc0f   : > { %v4658_v19 = vsel %vm1518_vm5, %v4626_v14, %v4637_v10 }
 0xc12   : > { %v4645_v16 = vpop.permute.xlu1 %4644 }
 0xc13   : > { %v4660_v20 = vsel %vm2855_vm6, %v4658_v19, %v4645_v16 }
 0xc1e   : > { %v4639_v12 = vpop.permute.xlu0 %4638 }
 0xc1f   : > { %v4659_v27 = vsel %vm1518_vm5, %v4630_v25, %v4639_v12 }
 0xc22   : > { %v4653_v22 = vpop.permute.xlu0 %4652 }
 0xc23   : > { %v4662_v26 = vsel %vm2858_vm7, %v4660_v20, %v4653_v22  ;;  %v4647_v24 = vpop.permute.xlu1 %4646  ;;  %v4902_v20 = vld [vmem:[%s6719_s22 + $0x30] sm:$0xff]  ;;  %v4903_v22 = vld [vmem:[%s6719_s22 + $0x38] sm:$0xff]  ;;  %s7338_s22 = smov (!%p5611_p5), %s7337_s7 }
 0xc24   : > { %6019 = vmatprep.mubr.msk.f32.mxu0 %vm1418_vm3, %v4662_v26  ;;  %v4661_v28 = vsel %vm2855_vm6, %v4659_v27, %v4647_v24  ;;  %v6179_v23 = vpack.c.bf16 %v4903_v22, %v4902_v20  ;;  %v5603_v26 = vld [vmem:[%s1271_s14] ss:$0 sm:$0xff]  ;;  %5046 = vst.msk [vmem:[%s7338_s22 + $0x8] sm:$0xff] (!%p5611_p5), %vm4911_vm9, %v6937_v29  ;;  %5047 = vst.msk [vmem:[%s7338_s22 + $0x10] sm:$0xff] (!%p5611_p5), %vm4911_vm9, %v6980_v54  ;;  %v6494_v22 = vmov (!%p5611_p5), 0  }
 0xc25   : > { %5048 = vst.msk [vmem:[%s7338_s22 + $0x18] sm:$0xff] (!%p5611_p5), %vm4911_vm9, %v6978_v52  ;;  %v5197_v20 = vld [vmem:[%s7340_s30] sm:$0xff] (!%p5611_p5)  ;;  %6399 = vset.pattern.permute.xlu1 (!%p5611_p5), %v6494_v22  ;;  %6398 = vset.pattern.permute.xlu0 (!%p5611_p5), %v6494_v22 }
 0xc27   : > { %v4655_v30 = vpop.permute.xlu1 %4654 }
 0xc28   : > { %v4663_v32 = vsel %vm2858_vm7, %v4661_v28, %v4655_v30 }
 0xc29   : > { %6020 = vmatmul.mubr.msk.f32.vlgmr.msra.gmra.mrb[34].mxu0 %vm1418_vm3, %v4663_v32 }
 0xc2a   : > { %6170 = vmatpush3.bf16.msra.mxu0 %v6167_v60 }
 0xc2b   : > { %6172 = vmatprep.subr.bf16.mxu0 %v6171_v62 }
 0xc2e   : > { %6174 = vmatpush3.bf16.msra.mxu0 %v6171_v62 }
 0xc2f   : > { %6176 = vmatprep.subr.bf16.mxu0 %v6175_v1 }
 0xc32   : > { %6178 = vmatpush3.bf16.msra.mxu0 %v6175_v1 }
 0xc33   : > { %6180 = vmatprep.subr.bf16.mxu0 %v6179_v23 }
 0xc36   : > { %6182 = vmatpush3.bf16.msra.mxu0 %v6179_v23 }
 0xcfc   : > { %v6021_v34 = vpop.f32.mrb[34].mxu0 }
 0xcfd   : > { %v4753_v35 = vadd.f32 %v6021_v34, %v5598_v18  ;;  %v4747_v36 = vpop.f32.mrb[35].mxu0 }
 0xcfe   : > { %v4748_v17 = vadd.f32 %v5598_v18, %v4747_v36  ;;  %v5606_v18 = vld [vmem:[%s1279_s1] ss:$0 sm:$0xff]  ;;  %s7342_s1 = sld [smem:[#allocation27_spill]] (!%p5611_p5) }
 0xcff   : > { %v4757_v38 = vadd.f32 %v4753_v35, %v6963_v37 }
 0xd00   : > { %v4756_v39 = vadd.f32 %v4748_v17, %v6957_v47 }
 0xd01   : > { %v4763_v40 = vsel %vm1418_vm3, %v4757_v38, 0.0 }
 0xd02   : > { %4764 = vadd.xlane.f32.xlu1 %v4763_v40  ;;  %v4760_v41 = vsel %vm1418_vm3, %v4756_v39, 0.0 }
 0xd03   : > { %4761 = vadd.xlane.f32.xlu0 %v4760_v41 }
 0xd8f   : > { %v4765_v33 = vpop.xlane.xlu1 %4764 }
 0xd90   : > { %v4767_v42 = vmul.f32 0.03125, %v4765_v33  ;;  %v4762_v43 = vpop.xlane.xlu0 %4761 }
 0xd91   : > { %v4766_v44 = vmul.f32 0.03125, %v4762_v43 }
 0xd92   : > { %v4769_v45 = vsub.f32 %v4757_v38, %v4767_v42 }
 0xd93   : > { %v4768_v46 = vsub.f32 %v4756_v39, %v4766_v44 }
 0xd94   : > { %v4771_v37 = vmul.f32 %v4769_v45, %v4769_v45 }
 0xd95   : > { %v4770_v48 = vmul.f32 %v4768_v46, %v4768_v46 }
 0xd96   : > { %v4775_v50 = vsel %vm1418_vm3, %v4771_v37, 0.0 }
 0xd97   : > { %v4772_v47 = vsel %vm1418_vm3, %v4770_v48, 0.0 }
 0xd98   : > { %4773 = vadd.xlane.f32.xlu0 %v4772_v47 }
 0xd9c   : > { %4776 = vadd.xlane.f32.xlu0 %v4775_v50 }
 0xe25   : > { %v4774_v2 = vpop.xlane.xlu0 %4773 }
 0xe26   : > { %v4778_v3 = vmul.f32 0.03125, %v4774_v2 }
 0xe28   : > { %v4780_v4 = vadd.f32 1e-05, %v4778_v3 }
 0xe29   : > { %v4777_v5 = vpop.xlane.xlu0 %4776 }
 0xe2a   : > { %6390 = vrsqrt.f32 %v4780_v4  ;;  %v4779_v13 = vmul.f32 0.03125, %v4777_v5 }
 0xe2c   : > { %v4781_v15 = vadd.f32 1e-05, %v4779_v13 }
 0xe2e   : > { %6392 = vrsqrt.f32 %v4781_v15 }
 0xe34   : > { %v6391_v6 = vpop.eup %6390 }
 0xe35   : > { %v4784_v8 = vmul.f32 %v6391_v6, %v4768_v46 }
 0xe37   : > { %v4792_v10 = vmul.f32 %v5601_v7, %v4784_v8 }
 0xe38   : > { %v6393_v11 = vpop.eup %6392 }
 0xe39   : > { %v4785_v12 = vmul.f32 %v6393_v11, %v4769_v45  ;;  %v4800_v14 = vadd.f32 %v5602_v9, %v4792_v10  ;;  %v5094_v10 = vld [vmem:[%s7339_s5 + $0x8] sm:$0xff] (!%p5611_p5)  ;;  %v5095_v11 = vld [vmem:[%s7339_s5 + $0x10] sm:$0xff] (!%p5611_p5) }
 0xe3b   : > { %v4793_v16 = vmul.f32 %v5601_v7, %v4785_v12  ;;  %6030 = vmatprep.mubr.msk.f32.mxu1 %vm1418_vm3, %v4800_v14 }
 0xe3d   : > { %v4801_v19 = vadd.f32 %v5602_v9, %v4793_v16  ;;  %v5093_v9 = vld [vmem:[%s7339_s5] sm:$0xff] (!%p5611_p5) }
 0xe3e   : > { %v6183_v12 = vpack.c.bf16 (!%p5611_p5), %v5094_v10, %v5093_v9 }
 0xe3f   : > { %6031 = vmatmul.mubr.msk.f32.vlgmr.msra.gmra.mrb[40].mxu1 %vm1418_vm3, %v4801_v19 }
 0xe40   : > { %6184 = vmatprep.subr.bf16.mxu0 (!%p5611_p5), %v6183_v12 }
 0xf12   : > { %v6032_v24 = vpop.f32.mrb[40].mxu1 }
 0xf13   : > { %v4891_v25 = vadd.f32 %v6032_v24, %v5603_v26  ;;  %v4885_v27 = vpop.f32.mrb[41].mxu1 }
 0xf14   : > { %v4886_v28 = vadd.f32 %v5603_v26, %v4885_v27 }
 0xf15   : > { %v4895_v32 = vmax.f32 %v4891_v25, 0.0 }
 0xf16   : > { %v4894_v30 = vmax.f32 %v4886_v28, 0.0 }
 0xf18   : > { %6049 = vmatprep.mubr.msk.f32.mxu0 %vm4911_vm9, %v4894_v30 }
 0xf19   : > { %6050 = vmatmul.mubr.msk.f32.vlgmr.msra.gmra.mrb[36].mxu0 %vm4911_vm9, %v4895_v32  ;;  %v5612_v32 = vld [vmem:[%s7341_s0] ss:$0 sm:$0xff] (!%p5611_p5) }
 0xf1a   : > { %6186 = vmatpush3.bf16.msra.mxu0 (!%p5611_p5), %v6183_v12 }
 0xfec   : > { %v6051_v34 = vpop.f32.mrb[36].mxu0 }
 0xfed   : > { %v4990_v35 = vadd.f32 %v6051_v34, %v5606_v18  ;;  %v4984_v36 = vpop.f32.mrb[37].mxu0  ;;  %v5613_v34 = vld [vmem:[%s7342_s1] ss:$0 sm:$0xff] (!%p5611_p5) }
 0xfee   : > { %v4985_v17 = vadd.f32 %v5606_v18, %v4984_v36 }
 0xfef   : > { %v4994_v38 = vadd.f32 %v4990_v35, %v4801_v19  ;;  %v5198_v19 = vld [vmem:[%s7340_s30 + $0x8] sm:$0xff] (!%p5611_p5) }
 0xff0   : > { %v4993_v39 = vadd.f32 %v4985_v17, %v4800_v14  ;;  %v5096_v14 = vld [vmem:[%s7339_s5 + $0x18] sm:$0xff] (!%p5611_p5) }
 0xff1   : > { %v5000_v40 = vsel %vm1418_vm3, %v4994_v38, 0.0  ;;  %v6187_v16 = vpack.c.bf16 (!%p5611_p5), %v5096_v14, %v5095_v11 }
 0xff2   : > { %5001 = vadd.xlane.f32.xlu0 %v5000_v40  ;;  %v4997_v41 = vsel %vm1418_vm3, %v4993_v39, 0.0 }
 0xff3   : > { %4998 = vadd.xlane.f32.xlu1 %v4997_v41  ;;  %6188 = vmatprep.subr.bf16.mxu0 (!%p5611_p5), %v6187_v16  ;;  %v5614_v41 = vld [vmem:[%s7343_s18] ss:$0 sm:$0xff] (!%p5611_p5) }
 0xff4   : > { %6190 = vmatpush3.bf16.msra.mxu0 (!%p5611_p5), %v6187_v16 }
0x107f   : > { %v5002_v33 = vpop.xlane.xlu0 %5001 }
0x1080   : > { %v5004_v42 = vmul.f32 0.03125, %v5002_v33  ;;  %v4999_v43 = vpop.xlane.xlu1 %4998 }
0x1081   : > { %v5003_v44 = vmul.f32 0.03125, %v4999_v43 }
0x1082   : > { %v5006_v45 = vsub.f32 %v4994_v38, %v5004_v42 }
0x1083   : > { %v5005_v46 = vsub.f32 %v4993_v39, %v5003_v44 }
0x1084   : > { %v5008_v48 = vmul.f32 %v5006_v45, %v5006_v45 }
0x1085   : > { %v5007_v47 = vmul.f32 %v5005_v46, %v5005_v46 }
0x1086   : > { %v5012_v37 = vsel %vm1418_vm3, %v5008_v48, 0.0 }
0x1087   : > { %5013 = vadd.xlane.f32.xlu0 %v5012_v37  ;;  %v5009_v50 = vsel %vm1418_vm3, %v5007_v47, 0.0 }
0x1088   : > { %5010 = vadd.xlane.f32.xlu1 %v5009_v50 }
0x1114   : > { %v5014_v51 = vpop.xlane.xlu0 %5013 }
0x1115   : > { %v5016_v53 = vmul.f32 0.03125, %v5014_v51  ;;  %v5011_v21 = vpop.xlane.xlu1 %5010 }
0x1116   : > { %v5015_v55 = vmul.f32 0.03125, %v5011_v21 }
0x1117   : > { %v5018_v57 = vadd.f32 1e-05, %v5016_v53 }
0x1118   : > { %v5017_v58 = vadd.f32 1e-05, %v5015_v55 }
0x1119   : > { %6394 = vrsqrt.f32 %v5018_v57 }
0x111a   : > { %6396 = vrsqrt.f32 %v5017_v58 }
0x1123   : > { %v6395_v49 = vpop.eup %6394 }
0x1124   : > { %v6397_v59 = vpop.eup %6396  ;;  %v5022_v60 = vmul.f32 %v6395_v49, %v5006_v45 }
0x1125   : > { %v5021_v62 = vmul.f32 %v6397_v59, %v5005_v46  ;;  %5044 = sbr.rel (%p5611_p5) target bundleno = 4956 (0x135c), region = 152 }
0x1126   : > { %v5030_v63 = vmul.f32 %v5609_v56, %v5022_v60 }
0x1127   : > { %v5029_v0 = vmul.f32 %v5609_v56, %v5021_v62 }
0x1128   : > { %v5038_v1 = vadd.f32 %v5610_v61, %v5030_v63 }
0x1129   : > { %v5037_v2 = vadd.f32 %v5610_v61, %v5029_v0 }
0x112a   : > { %5040 = vst.msk [vmem:[#allocation2 + $0x8] sm:$0xff] %vm1418_vm3, %v5038_v1  ;;  %v5054_v4 = vsel (!%p5611_p5), %vm1418_vm3, %v5038_v1, 0.0 }
0x112b   : > { %5039 = vst.msk [vmem:[#allocation2] sm:$0xff] %vm1418_vm3, %v5037_v2  ;;  %v5051_v3 = vsel (!%p5611_p5), %vm1418_vm3, %v5037_v2, 0.0 }
0x112c   : > { %5052 = vadd.xlane.f32.xlu0 %v5051_v3 }
0x1130   : > { %5055 = vadd.xlane.f32.xlu0 %v5054_v4 }
0x1146   : > { %5201 = vperm.xlu0 %6398, %v5197_v20  }
0x11b9   : > { %v5053_v5 = vpop.xlane.xlu0 %5052 }
0x11ba   : > { %v5057_v13 = vmul.f32 0.03125, %v5053_v5 }
0x11bc   : > { %v5059_v31 = vsub.f32 %v5037_v2, %v5057_v13 }
0x11bd   : > { %v5056_v15 = vpop.xlane.xlu0 %5055 }
0x11be   : > { %v5058_v6 = vmul.f32 0.03125, %v5056_v15  ;;  %v5061_v29 = vmul.f32 %v5059_v31, %v5059_v31 }
0x11c0   : > { %v5060_v7 = vsub.f32 %v5038_v1, %v5058_v6  ;;  %v5063_v54 = vsel %vm1418_vm3, %v5061_v29, 0.0 }
0x11c1   : > { %5064 = vadd.xlane.f32.xlu1 %v5063_v54 }
0x11c2   : > { %v5062_v52 = vmul.f32 %v5060_v7, %v5060_v7 }
0x11c4   : > { %v5066_v8 = vsel %vm1418_vm3, %v5062_v52, 0.0 }
0x11c5   : > { %5067 = vadd.xlane.f32.xlu1 %v5066_v8  ;;  %v5202_v53 = vpop.permute.xlu0 %5201 }
0x11d6   : > { %5206 = vperm.xlu1 %6399, %v5198_v19  }
0x124e   : > { %v5065_v23 = vpop.xlane.xlu1 %5064 }
0x124f   : > { %v5069_v26 = vmul.f32 0.03125, %v5065_v23 }
0x1251   : > { %v5071_v24 = vadd.f32 1e-05, %v5069_v26 }
0x1252   : > { %v5068_v25 = vpop.xlane.xlu1 %5067 }
0x1253   : > { %6400 = vrsqrt.f32 %v5071_v24  ;;  %v5070_v27 = vmul.f32 0.03125, %v5068_v25 }
0x1255   : > { %v5072_v28 = vadd.f32 1e-05, %v5070_v27 }
0x1256   : > { %v5207_v51 = vpop.permute.xlu1 %5206 }
0x1257   : > { %6402 = vrsqrt.f32 %v5072_v28 }
0x125d   : > { %v6401_v30 = vpop.eup %6400 }
0x125e   : > { %v5075_v18 = vmul.f32 %v6401_v30, %v5059_v31 }
0x1260   : > { %v5083_v35 = vmul.f32 %v5612_v32, %v5075_v18 }
0x1261   : > { %v6403_v36 = vpop.eup %6402 }
0x1262   : > { %v5076_v17 = vmul.f32 %v6403_v36, %v5060_v7  ;;  %v5091_v38 = vadd.f32 %v5613_v34, %v5083_v35 }
0x1264   : > { %v5084_v39 = vmul.f32 %v5612_v32, %v5076_v17  ;;  %6060 = vmatprep.mubr.msk.f32.mxu0 %vm1418_vm3, %v5091_v38 }
0x1266   : > { %v5092_v40 = vadd.f32 %v5613_v34, %v5084_v39 }
0x1268   : > { %6061 = vmatmul.mubr.msk.f32.vlgmr.msra.gmra.mrb[0].mxu0 %vm1418_vm3, %v5092_v40 }
0x133b   : > { %v6062_v33 = vpop.f32.mrb[0].mxu0 }
0x133c   : > { %v5182_v42 = vadd.f32 %v6062_v33, %v5614_v41  ;;  %v5176_v43 = vpop.f32.mrb[1].mxu0 }
0x133d   : > { %v5177_v44 = vadd.f32 %v5614_v41, %v5176_v43 }
0x133e   : > { %v5618_v45 = vmul.f32 -1.442695, %v5182_v42 }
0x133f   : > { %v5617_v46 = vmul.f32 -1.442695, %v5177_v44 }
0x1340   : > { %6404 = vpow2.f32 %v5618_v45 }
0x1341   : > { %6406 = vpow2.f32 %v5617_v46 }
0x134a   : > { %v6405_v48 = vpop.eup %6404 }
0x134b   : > { %v6407_v47 = vpop.eup %6406  ;;  %v5192_v37 = vadd.f32 1.0, %v6405_v48 }
0x134c   : > { %v5191_v50 = vadd.f32 1.0, %v6407_v47 }
0x134d   : > { %6408 = vrcp.f32 %v5192_v37 }
0x134e   : > { %6410 = vrcp.f32 %v5191_v50 }
0x1357   : > { %v6409_v21 = vpop.eup %6408 }
0x1358   : > { %v6411_v55 = vpop.eup %6410  ;;  %v5210_v57 = vmul.f32 %v6409_v21, %v5207_v51 }
0x1359   : > { %v5209_v58 = vmul.f32 %v6411_v55, %v5202_v53 }
0x135a   : > { %5212 = vst [vmem:[%s7344_s25 + $0x8] sm:$0xff] %v5210_v57 }
0x135b   : > { %5211 = vst [vmem:[%s7344_s25] sm:$0xff] %v5209_v58 }
0x135c PF: > { %s7345_s6 = sld [smem:[#allocation34_spill]]  ;;  %s6495_s29 = smov [#allocation2]  }
0x135d   : > { %s5222_s23 = sshll.u32 %s6495_s29, 4  ;;  %s5223_s23 = int_to_ptr.vmem [resolvable:$true] %s5222_s23 }
0x135e   : > { %s6412_s3 = scalar_lea.vmem %s5223_s23, 256  ;;  %p6419_p10 = scmp.lt.s32.totalorder %s5223_s23, %s5223_s23 }
0x135f   : > { %p6413_p7 = scmp.ne.s32.totalorder %s5223_s23, %s6412_s3  ;;  %p6420_p11 = scmp.lt.s32.totalorder %s6412_s3, %s6412_s3 }
0x1361   : > { %p6421_p12 = por %p6420_p11, %p6419_p10 }
0x1362   : > { %p6195_p6 = scmp.eq.s32.totalorder %s7345_s6, 1 }
0x1364   : > { %p6414_p8 = pnand %p6413_p7, %p6195_p6 }
0x1366   : > { %p6415_p9 = pneg %p6414_p8 }
0x1368   : > { %p6422_p13 = pnand %p6421_p12, %p6415_p9 }
0x136a   : > { %6425 = shalt.err (!%p6422_p13)
}
0x136b   : > { %s7346_s19 = sld [smem:[#allocation31_spill]] }
0x1371   : > { %s6426_s10 = scalar_lea.hbm %s7346_s19, 256 }
0x1372   : > { %p6427_p0 = scmp.ne.s32.totalorder %s7346_s19, %s6426_s10  ;;  %p6432_p3 = scmp.lt.u32.totalorder %s6426_s10, %s7346_s19 }
0x1374   : > { %p6428_p1 = pnand %p6427_p0, %p6195_p6 }
0x1376   : > { %p6429_p2 = pneg %p6428_p1 }
0x1378   : > { %p6434_p4 = pnand %p6432_p3, %p6429_p2 }
0x137a   : > { %6437 = shalt.err (!%p6434_p4)
}
0x137b   : > { %s6496_s13 = smov 128  }
0x137c   : > { %6192 = dma.vmem_to_hbm [thread:$0]  (%p6195_p6), %s5223_s23, 256, %s7346_s19, [#allocation3], %s6496_s13, %s6496_s13, %s6490_s2  }
0x137d   : > { %6443 = dma.done.wait (%p6195_p6), [#allocation3], 256  }
0x137e   : > { %6445 = vsyncadd (%p6195_p6), [#allocation3], 4294967040 }
0x137f PF: > { %s7347_s15 = sld [smem:[#allocation33_spill]] }
0x1385   : > { %s79_s7 = sadd.s32 1, %s7347_s15  }
0x1386   : > { %p76_p5 = scmp.ge.s32.totalorder %s79_s7, 4  }
0x1388   :  { %78 = sbr.rel (!%p76_p5) target bundleno = 75 (0x4b), region = 285 }
0x138f   :  { %5247 = vsyncpa [#allocation3], 1 }
0x1390   :  { %5249 = vsyncpa [#allocation3 + $0x1], 1 }

</bundles_post_ra>
